<compile_context>
chip_gen: v6e
topology: v6e:2x2x1
jax: 0.10.0
libtpu: 0.0.40
codegen_flags: <defaults>
</compile_context>

<pallas_src>
import functools

import jax
import jax.numpy as jnp
from jax import lax
from jax.experimental import pallas as pl
from jax.experimental.pallas import tpu as pltpu

# Layer sizes of the Actor MLP.
DIMS = [2, 50, 50, 50, 50, 4]
_HID = max(DIMS)            # 50: packing pad width
_N_LAYERS = len(DIMS) - 1   # 5

# Rows per in-kernel sub-chunk.  A (256, 50) f32 activation is 32 vregs, so
# per-layer live ranges stay well under the 64-vreg file even when the grid
# tile is thousands of rows.
_CHUNK = 256

# Grid-tile ladder: every entry is a multiple of 8 and either <= _CHUNK or a
# multiple of _CHUNK, so the in-kernel chunk loop always divides the tile.
_TILE_LADDER = (4096, 2048, 1024, 512, 256, 128, 64, 32, 16, 8)


def actor_mlp_kernel(x_ref, w_ref, b_ref, o_ref, *, chunk, n_chunks):
    """Fused 5-layer MLP on one (tile, 2) slab of inputs.

    w_ref: (5, 50, 50) packed weights (layer i zero-padded), matmul dtype.
    b_ref: (5, 50)     packed biases, f32 (bias-add / ReLU stay in f32).
    """
    mm_dtype = w_ref.dtype

    # Parameters are tiny and grid-step invariant: load once, outside the
    # chunk loop, so nothing parameter-related is re-done per sub-chunk.
    w0 = w_ref[0][0:DIMS[0], :].astype(jnp.float32)            # (2, 50) for VPU
    w1, w2, w3, w4 = w_ref[1], w_ref[2], w_ref[3], w_ref[4]    # (50, 50) each
    b0 = b_ref[0:1, :]
    b1 = b_ref[1:2, :]
    b2 = b_ref[2:3, :]
    b3 = b_ref[3:4, :]
    b4 = b_ref[4:5, :]

    def compute_chunk(row):
        x = x_ref[pl.ds(row, chunk), :].astype(jnp.float32)     # (chunk, 2)

        # Layer 0 on the VPU: with K=2 an MXU contraction would be ~98% zero
        # padding, so two broadcast multiply-adds do the work on an otherwise
        # idle VALU slot.  (If the Mosaic dump ever shows a relayout here
        # instead of a lane-broadcast, feed x pre-split as two (chunk, 1)
        # columns.)
        h = x[:, 0:1] * w0[0:1, :] + x[:, 1:2] * w0[1:2, :] + b0
        h = jnp.maximum(h, 0.0)

        # Layers 1-3: MXU matmuls in the packed weight dtype (bf16 is native
        # on the MXU; f32 is a multi-pass emulation), f32 accumulation,
        # bias-add / ReLU in f32.
        h = jnp.dot(h.astype(mm_dtype), w1, preferred_element_type=jnp.float32) + b1
        h = jnp.maximum(h, 0.0)
        h = jnp.dot(h.astype(mm_dtype), w2, preferred_element_type=jnp.float32) + b2
        h = jnp.maximum(h, 0.0)
        h = jnp.dot(h.astype(mm_dtype), w3, preferred_element_type=jnp.float32) + b3
        h = jnp.maximum(h, 0.0)

        # Layer 4 (logits head): W4/b4 are zero-padded from 4 to 50 columns,
        # so columns 4..49 of the result are exactly 0; keep the first 4.
        logits = jnp.dot(h.astype(mm_dtype), w4,
                         preferred_element_type=jnp.float32) + b4
        o_ref[pl.ds(row, chunk), :] = logits[:, 0:DIMS[-1]].astype(o_ref.dtype)

    if n_chunks == 1:
        compute_chunk(0)
    else:
        def body(ci, carry):
            compute_chunk(pl.multiple_of(ci * chunk, chunk))
            return carry
        lax.fori_loop(0, n_chunks, body, 0, unroll=True)


def _num_tensorcores_per_chip():
    """Best-effort TensorCore-per-chip count (2 on v7x, 1 on v5e/v6e)."""
    try:
        info = pltpu.get_tpu_info()
        for attr in ("num_tensorcores", "tensorcores_per_chip", "num_cores",
                     "core_count"):
            v = getattr(info, attr, None)
            if isinstance(v, int) and v > 0:
                return v
    except Exception:
        pass
    try:
        kind = jax.devices()[0].device_kind.lower()
        if "v7" in kind or "7x" in kind:
            return 2
    except Exception:
        pass
    return 1


def _choose_batch_tile(batch, num_tc):
    """Generation-aware batch tile.

    Single-TC chips (v5e/v6e): smallest ladder tile that covers the whole
    batch in ONE grid step (cap 4096) — no forced extra step, since a second
    step is pure per-step overhead there.  Multi-TC chips (v7x): keep
    >= num_tc grid steps so the "parallel" batch axis shards across cores.
    Batches larger than num_tc*4096 fall back to 4096-row tiles.
    """
    min_steps = max(1, num_tc)
    best = _TILE_LADDER[0]
    for tile in _TILE_LADDER:
        if tile * min_steps >= batch:
            best = tile
    return best


def pack_actor_params(params, matmul_dtype=jnp.bfloat16):
    """Pack the 5 (W, b) pairs into one (5,50,50) zero-padded weight slab (in
    the matmul dtype) and one (5,50) f32 bias slab.  One-time host-side prep:
    collapses 10 tiny pallas_call inputs / DMA streams into 2 and pre-casts
    the weights so no per-step weight cast is needed in the kernel."""
    w_all = jnp.zeros((_N_LAYERS, _HID, _HID), jnp.float32)
    b_all = jnp.zeros((_N_LAYERS, _HID), jnp.float32)
    for i, (w, b) in enumerate(params):
        w_all = w_all.at[i, :w.shape[0], :w.shape[1]].set(w)
        b_all = b_all.at[i, :b.shape[0]].set(b)
    return w_all.astype(matmul_dtype), b_all


@jax.jit
def actor_forward(x, w_all, b_all):
    """x: (B, 2) float32; w_all/b_all from pack_actor_params."""
    B, din = x.shape
    assert din == DIMS[0]
    dout = DIMS[-1]

    num_tc = _num_tensorcores_per_chip()
    tile = _choose_batch_tile(B, num_tc)
    chunk = min(_CHUNK, tile)
    n_chunks = tile // chunk
    # Ragged batches: partial last block is masked by Pallas — no wrapper-side
    # pad of x or slice of the output (saves two HBM round-trips).
    grid = (pl.cdiv(B, tile),)

    kernel = functools.partial(actor_mlp_kernel, chunk=chunk, n_chunks=n_chunks)

    matmul_flops = 2 * B * sum(a * b for a, b in zip(DIMS[:-1], DIMS[1:]))
    bytes_accessed = (B * (din + dout) * 4
                      + w_all.size * w_all.dtype.itemsize + b_all.size * 4)
    cost = pl.CostEstimate(flops=matmul_flops, transcendentals=0,
                           bytes_accessed=bytes_accessed)

    return pl.pallas_call(
        kernel,
        out_shape=jax.ShapeDtypeStruct((B, dout), jnp.float32),
        grid_spec=pltpu.PrefetchScalarGridSpec(
            num_scalar_prefetch=0,
            grid=grid,
            in_specs=[
                pl.BlockSpec((tile, din), lambda i: (i, 0)),
                # Parameter slabs: full (small) arrays, same block every grid
                # step, so they stay resident.  pipeline_mode=pl.Buffered(1)
                # would halve their ~25 KiB double-buffer VMEM; skipped for
                # lowering safety (negligible at this size).
                pl.BlockSpec(w_all.shape, lambda i: (0, 0, 0)),
                pl.BlockSpec(b_all.shape, lambda i: (0, 0)),
            ],
            out_specs=pl.BlockSpec((tile, dout), lambda i: (i, 0)),
        ),
        compiler_params=pltpu.CompilerParams(
            dimension_semantics=("parallel",)),
        cost_estimate=cost,
    )(x, w_all, b_all)


def init_actor_params(key):
    """PyTorch nn.Linear default init: U[-1/sqrt(fan_in), +1/sqrt(fan_in)]."""
    params = []
    for li in range(len(DIMS) - 1):
        fan_in, fan_out = DIMS[li], DIMS[li + 1]
        key, kw, kb = jax.random.split(key, 3)
        bound = 1.0 / jnp.sqrt(jnp.float32(fan_in))
        w = jax.random.uniform(kw, (fan_in, fan_out), jnp.float32, -bound, bound)
        b = jax.random.uniform(kb, (fan_out,), jnp.float32, -bound, bound)
        params.append((w, b))
    return params


def actor_forward_ref(x, params):
    """Plain-JAX reference (exact f32) for correctness check."""
    h = x
    n = len(params)
    for i, (w, b) in enumerate(params):
        h = h @ w + b
        if i < n - 1:
            h = jnp.maximum(h, 0.0)
    return h


if __name__ == "__main__":
    key = jax.random.PRNGKey(0)
    kx1, kx2, kp = jax.random.split(key, 3)
    params = init_actor_params(kp)

    # Default fast path: bf16 weights / bf16 MXU dots, f32 accumulation.
    w_bf16, b_all = pack_actor_params(params, jnp.bfloat16)
    x_big = jax.random.normal(kx1, (512, DIMS[0]), dtype=jnp.float32)
    out_big = jax.block_until_ready(actor_forward(x_big, w_bf16, b_all))
    ref_big = actor_forward_ref(x_big, params)
    assert out_big.shape == (512, DIMS[-1])
    assert jnp.allclose(out_big, ref_big, atol=5e-2, rtol=5e-2), \
        "mismatch (bf16 matmul path)"

    # Exact f32 path on a ragged batch (exercises the partial last block —
    # there is no wrapper-side pad/slice any more).
    w_f32, b_f32 = pack_actor_params(params, jnp.float32)
    x_small = jax.random.normal(kx2, (37, DIMS[0]), dtype=jnp.float32)
    out_small = jax.block_until_ready(actor_forward(x_small, w_f32, b_f32))
    ref_small = actor_forward_ref(x_small, params)
    assert out_small.shape == (37, DIMS[-1])
    assert jnp.allclose(out_small, ref_small, atol=1e-4, rtol=1e-4), \
        "mismatch (f32 ragged path)"

    print("KERNEL_OK")
</pallas_src>

<mosaic_0001>
module attributes {stable_mosaic.version = 11 : i64} {
  func.func @actor_mlp_kernel(%arg0: i32, %arg1: memref<512x2xf32, #tpu.memory_space<vmem>>, %arg2: memref<5x50x50xbf16, #tpu.memory_space<vmem>>, %arg3: memref<5x50xf32, #tpu.memory_space<vmem>>, %arg4: memref<512x4xf32, #tpu.memory_space<vmem>>) attributes {dimension_semantics = [#tpu.dimension_semantics<parallel>], iteration_bounds = array<i64: 1>, scalar_prefetch = 0 : i64, scratch_operands = 0 : i64, tpu.core_type = #tpu.core_type<tc>, window_params = [{transform_indices = @transform_0, window_bounds = array<i64: 512, 2>}, {pipeline_mode = #tpu.pipeline_mode<synchronous>, transform_indices = @transform_1, window_bounds = array<i64: 5, 50, 50>}, {pipeline_mode = #tpu.pipeline_mode<synchronous>, transform_indices = @transform_2, window_bounds = array<i64: 5, 50>}, {transform_indices = @transform_3, window_bounds = array<i64: 512, 4>}]} {
    %c0 = arith.constant 0 : index
    %c0_0 = arith.constant 0 : index
    %c0_1 = arith.constant 0 : index
    %0 = vector.load %arg2[%c0, %c0_0, %c0_1] : memref<5x50x50xbf16, #tpu.memory_space<vmem>>, vector<1x50x50xbf16>
    %1 = vector.shape_cast %0 : vector<1x50x50xbf16> to vector<50x50xbf16>
    %2 = vector.extract_strided_slice %1 {offsets = [0, 0], sizes = [2, 50], strides = [1, 1]} : vector<50x50xbf16> to vector<2x50xbf16>
    %3 = arith.extf %2 : vector<2x50xbf16> to vector<2x50xf32>
    %c1 = arith.constant 1 : index
    %c0_2 = arith.constant 0 : index
    %c0_3 = arith.constant 0 : index
    %4 = vector.load %arg2[%c1, %c0_2, %c0_3] : memref<5x50x50xbf16, #tpu.memory_space<vmem>>, vector<1x50x50xbf16>
    %5 = vector.shape_cast %4 : vector<1x50x50xbf16> to vector<50x50xbf16>
    %c2 = arith.constant 2 : index
    %c0_4 = arith.constant 0 : index
    %c0_5 = arith.constant 0 : index
    %6 = vector.load %arg2[%c2, %c0_4, %c0_5] : memref<5x50x50xbf16, #tpu.memory_space<vmem>>, vector<1x50x50xbf16>
    %7 = vector.shape_cast %6 : vector<1x50x50xbf16> to vector<50x50xbf16>
    %c3 = arith.constant 3 : index
    %c0_6 = arith.constant 0 : index
    %c0_7 = arith.constant 0 : index
    %8 = vector.load %arg2[%c3, %c0_6, %c0_7] : memref<5x50x50xbf16, #tpu.memory_space<vmem>>, vector<1x50x50xbf16>
    %9 = vector.shape_cast %8 : vector<1x50x50xbf16> to vector<50x50xbf16>
    %c4 = arith.constant 4 : index
    %c0_8 = arith.constant 0 : index
    %c0_9 = arith.constant 0 : index
    %10 = vector.load %arg2[%c4, %c0_8, %c0_9] : memref<5x50x50xbf16, #tpu.memory_space<vmem>>, vector<1x50x50xbf16>
    %11 = vector.shape_cast %10 : vector<1x50x50xbf16> to vector<50x50xbf16>
    %c0_10 = arith.constant 0 : index
    %c0_11 = arith.constant 0 : index
    %12 = vector.load %arg3[%c0_10, %c0_11] : memref<5x50xf32, #tpu.memory_space<vmem>>, vector<1x50xf32>
    %c1_12 = arith.constant 1 : index
    %c0_13 = arith.constant 0 : index
    %13 = vector.load %arg3[%c1_12, %c0_13] : memref<5x50xf32, #tpu.memory_space<vmem>>, vector<1x50xf32>
    %c2_14 = arith.constant 2 : index
    %c0_15 = arith.constant 0 : index
    %14 = vector.load %arg3[%c2_14, %c0_15] : memref<5x50xf32, #tpu.memory_space<vmem>>, vector<1x50xf32>
    %c3_16 = arith.constant 3 : index
    %c0_17 = arith.constant 0 : index
    %15 = vector.load %arg3[%c3_16, %c0_17] : memref<5x50xf32, #tpu.memory_space<vmem>>, vector<1x50xf32>
    %c4_18 = arith.constant 4 : index
    %c0_19 = arith.constant 0 : index
    %16 = vector.load %arg3[%c4_18, %c0_19] : memref<5x50xf32, #tpu.memory_space<vmem>>, vector<1x50xf32>
    %c0_i32 = arith.constant 0 : i32
    %c256_i32 = arith.constant 256 : i32
    %17 = arith.muli %c0_i32, %c256_i32 : i32
    %18 = tpu.assume_multiple %17, 256 : i32
    %19 = arith.index_cast %18 : i32 to index
    %c0_20 = arith.constant 0 : index
    %20 = vector.load %arg1[%19, %c0_20] : memref<512x2xf32, #tpu.memory_space<vmem>>, vector<256x2xf32>
    %21 = vector.extract_strided_slice %20 {offsets = [0, 0], sizes = [256, 1], strides = [1, 1]} : vector<256x2xf32> to vector<256x1xf32>
    %22 = vector.extract_strided_slice %3 {offsets = [0, 0], sizes = [1, 50], strides = [1, 1]} : vector<2x50xf32> to vector<1x50xf32>
    %23 = vector.broadcast %21 : vector<256x1xf32> to vector<256x50xf32>
    %24 = vector.broadcast %22 : vector<1x50xf32> to vector<256x50xf32>
    %25 = arith.mulf %23, %24 : vector<256x50xf32>
    %26 = vector.extract_strided_slice %20 {offsets = [0, 1], sizes = [256, 1], strides = [1, 1]} : vector<256x2xf32> to vector<256x1xf32>
    %27 = vector.extract_strided_slice %3 {offsets = [1, 0], sizes = [1, 50], strides = [1, 1]} : vector<2x50xf32> to vector<1x50xf32>
    %28 = vector.broadcast %26 : vector<256x1xf32> to vector<256x50xf32>
    %29 = vector.broadcast %27 : vector<1x50xf32> to vector<256x50xf32>
    %30 = arith.mulf %28, %29 : vector<256x50xf32>
    %31 = arith.addf %25, %30 : vector<256x50xf32>
    %32 = vector.broadcast %12 : vector<1x50xf32> to vector<256x50xf32>
    %33 = arith.addf %31, %32 : vector<256x50xf32>
    %cst = arith.constant 0.000000e+00 : f32
    %34 = vector.broadcast %cst : f32 to vector<256x50xf32>
    %35 = arith.maximumf %33, %34 : vector<256x50xf32>
    %36 = arith.truncf %35 : vector<256x50xf32> to vector<256x50xbf16>
    %cst_21 = arith.constant dense<0.000000e+00> : vector<256x50xf32>
    %37 = tpu.matmul %36, %5, %cst_21 {dimension_numbers = #tpu.dot_dimension_numbers<[1], [0], [0], [1], [0, 0, 1, 1], [], []>} : vector<256x50xbf16>, vector<50x50xbf16>, vector<256x50xf32> -> vector<256x50xf32>
    %38 = vector.broadcast %13 : vector<1x50xf32> to vector<256x50xf32>
    %39 = arith.addf %37, %38 : vector<256x50xf32>
    %cst_22 = arith.constant 0.000000e+00 : f32
    %40 = vector.broadcast %cst_22 : f32 to vector<256x50xf32>
    %41 = arith.maximumf %39, %40 : vector<256x50xf32>
    %42 = arith.truncf %41 : vector<256x50xf32> to vector<256x50xbf16>
    %cst_23 = arith.constant dense<0.000000e+00> : vector<256x50xf32>
    %43 = tpu.matmul %42, %7, %cst_23 {dimension_numbers = #tpu.dot_dimension_numbers<[1], [0], [0], [1], [0, 0, 1, 1], [], []>} : vector<256x50xbf16>, vector<50x50xbf16>, vector<256x50xf32> -> vector<256x50xf32>
    %44 = vector.broadcast %14 : vector<1x50xf32> to vector<256x50xf32>
    %45 = arith.addf %43, %44 : vector<256x50xf32>
    %cst_24 = arith.constant 0.000000e+00 : f32
    %46 = vector.broadcast %cst_24 : f32 to vector<256x50xf32>
    %47 = arith.maximumf %45, %46 : vector<256x50xf32>
    %48 = arith.truncf %47 : vector<256x50xf32> to vector<256x50xbf16>
    %cst_25 = arith.constant dense<0.000000e+00> : vector<256x50xf32>
    %49 = tpu.matmul %48, %9, %cst_25 {dimension_numbers = #tpu.dot_dimension_numbers<[1], [0], [0], [1], [0, 0, 1, 1], [], []>} : vector<256x50xbf16>, vector<50x50xbf16>, vector<256x50xf32> -> vector<256x50xf32>
    %50 = vector.broadcast %15 : vector<1x50xf32> to vector<256x50xf32>
    %51 = arith.addf %49, %50 : vector<256x50xf32>
    %cst_26 = arith.constant 0.000000e+00 : f32
    %52 = vector.broadcast %cst_26 : f32 to vector<256x50xf32>
    %53 = arith.maximumf %51, %52 : vector<256x50xf32>
    %54 = arith.truncf %53 : vector<256x50xf32> to vector<256x50xbf16>
    %cst_27 = arith.constant dense<0.000000e+00> : vector<256x50xf32>
    %55 = tpu.matmul %54, %11, %cst_27 {dimension_numbers = #tpu.dot_dimension_numbers<[1], [0], [0], [1], [0, 0, 1, 1], [], []>} : vector<256x50xbf16>, vector<50x50xbf16>, vector<256x50xf32> -> vector<256x50xf32>
    %56 = vector.broadcast %16 : vector<1x50xf32> to vector<256x50xf32>
    %57 = arith.addf %55, %56 : vector<256x50xf32>
    %58 = vector.extract_strided_slice %57 {offsets = [0, 0], sizes = [256, 4], strides = [1, 1]} : vector<256x50xf32> to vector<256x4xf32>
    %59 = arith.index_cast %18 : i32 to index
    %c0_28 = arith.constant 0 : index
    %60 = vector.load %arg4[%59, %c0_28] : memref<512x4xf32, #tpu.memory_space<vmem>>, vector<256x4xf32>
    tpu.vector_store %arg4[%59, %c0_28], %58 {strides = array<i32>} : memref<512x4xf32, #tpu.memory_space<vmem>>, vector<256x4xf32>,
    %c1_i32 = arith.constant 1 : i32
    %c256_i32_29 = arith.constant 256 : i32
    %61 = arith.muli %c1_i32, %c256_i32_29 : i32
    %62 = tpu.assume_multiple %61, 256 : i32
    %63 = arith.index_cast %62 : i32 to index
    %c0_30 = arith.constant 0 : index
    %64 = vector.load %arg1[%63, %c0_30] : memref<512x2xf32, #tpu.memory_space<vmem>>, vector<256x2xf32>
    %65 = vector.extract_strided_slice %64 {offsets = [0, 0], sizes = [256, 1], strides = [1, 1]} : vector<256x2xf32> to vector<256x1xf32>
    %66 = vector.extract_strided_slice %3 {offsets = [0, 0], sizes = [1, 50], strides = [1, 1]} : vector<2x50xf32> to vector<1x50xf32>
    %67 = vector.broadcast %65 : vector<256x1xf32> to vector<256x50xf32>
    %68 = vector.broadcast %66 : vector<1x50xf32> to vector<256x50xf32>
    %69 = arith.mulf %67, %68 : vector<256x50xf32>
    %70 = vector.extract_strided_slice %64 {offsets = [0, 1], sizes = [256, 1], strides = [1, 1]} : vector<256x2xf32> to vector<256x1xf32>
    %71 = vector.extract_strided_slice %3 {offsets = [1, 0], sizes = [1, 50], strides = [1, 1]} : vector<2x50xf32> to vector<1x50xf32>
    %72 = vector.broadcast %70 : vector<256x1xf32> to vector<256x50xf32>
    %73 = vector.broadcast %71 : vector<1x50xf32> to vector<256x50xf32>
    %74 = arith.mulf %72, %73 : vector<256x50xf32>
    %75 = arith.addf %69, %74 : vector<256x50xf32>
    %76 = vector.broadcast %12 : vector<1x50xf32> to vector<256x50xf32>
    %77 = arith.addf %75, %76 : vector<256x50xf32>
    %cst_31 = arith.constant 0.000000e+00 : f32
    %78 = vector.broadcast %cst_31 : f32 to vector<256x50xf32>
    %79 = arith.maximumf %77, %78 : vector<256x50xf32>
    %80 = arith.truncf %79 : vector<256x50xf32> to vector<256x50xbf16>
    %cst_32 = arith.constant dense<0.000000e+00> : vector<256x50xf32>
    %81 = tpu.matmul %80, %5, %cst_32 {dimension_numbers = #tpu.dot_dimension_numbers<[1], [0], [0], [1], [0, 0, 1, 1], [], []>} : vector<256x50xbf16>, vector<50x50xbf16>, vector<256x50xf32> -> vector<256x50xf32>
    %82 = vector.broadcast %13 : vector<1x50xf32> to vector<256x50xf32>
    %83 = arith.addf %81, %82 : vector<256x50xf32>
    %cst_33 = arith.constant 0.000000e+00 : f32
    %84 = vector.broadcast %cst_33 : f32 to vector<256x50xf32>
    %85 = arith.maximumf %83, %84 : vector<256x50xf32>
    %86 = arith.truncf %85 : vector<256x50xf32> to vector<256x50xbf16>
    %cst_34 = arith.constant dense<0.000000e+00> : vector<256x50xf32>
    %87 = tpu.matmul %86, %7, %cst_34 {dimension_numbers = #tpu.dot_dimension_numbers<[1], [0], [0], [1], [0, 0, 1, 1], [], []>} : vector<256x50xbf16>, vector<50x50xbf16>, vector<256x50xf32> -> vector<256x50xf32>
    %88 = vector.broadcast %14 : vector<1x50xf32> to vector<256x50xf32>
    %89 = arith.addf %87, %88 : vector<256x50xf32>
    %cst_35 = arith.constant 0.000000e+00 : f32
    %90 = vector.broadcast %cst_35 : f32 to vector<256x50xf32>
    %91 = arith.maximumf %89, %90 : vector<256x50xf32>
    %92 = arith.truncf %91 : vector<256x50xf32> to vector<256x50xbf16>
    %cst_36 = arith.constant dense<0.000000e+00> : vector<256x50xf32>
    %93 = tpu.matmul %92, %9, %cst_36 {dimension_numbers = #tpu.dot_dimension_numbers<[1], [0], [0], [1], [0, 0, 1, 1], [], []>} : vector<256x50xbf16>, vector<50x50xbf16>, vector<256x50xf32> -> vector<256x50xf32>
    %94 = vector.broadcast %15 : vector<1x50xf32> to vector<256x50xf32>
    %95 = arith.addf %93, %94 : vector<256x50xf32>
    %cst_37 = arith.constant 0.000000e+00 : f32
    %96 = vector.broadcast %cst_37 : f32 to vector<256x50xf32>
    %97 = arith.maximumf %95, %96 : vector<256x50xf32>
    %98 = arith.truncf %97 : vector<256x50xf32> to vector<256x50xbf16>
    %cst_38 = arith.constant dense<0.000000e+00> : vector<256x50xf32>
    %99 = tpu.matmul %98, %11, %cst_38 {dimension_numbers = #tpu.dot_dimension_numbers<[1], [0], [0], [1], [0, 0, 1, 1], [], []>} : vector<256x50xbf16>, vector<50x50xbf16>, vector<256x50xf32> -> vector<256x50xf32>
    %100 = vector.broadcast %16 : vector<1x50xf32> to vector<256x50xf32>
    %101 = arith.addf %99, %100 : vector<256x50xf32>
    %102 = vector.extract_strided_slice %101 {offsets = [0, 0], sizes = [256, 4], strides = [1, 1]} : vector<256x50xf32> to vector<256x4xf32>
    %103 = arith.index_cast %62 : i32 to index
    %c0_39 = arith.constant 0 : index
    %104 = vector.load %arg4[%103, %c0_39] : memref<512x4xf32, #tpu.memory_space<vmem>>, vector<256x4xf32>
    tpu.vector_store %arg4[%103, %c0_39], %102 {strides = array<i32>} : memref<512x4xf32, #tpu.memory_space<vmem>>, vector<256x4xf32>,
    %c2_i32 = arith.constant 2 : i32
    return
  }
  func.func @transform_0(%arg0: i32) -> (i32, i32) {
    %c0_i32 = arith.constant 0 : i32
    %c0_i32_0 = arith.constant 0 : i32
    return %arg0, %c0_i32 : i32, i32
  }
  func.func @transform_1(%arg0: i32) -> (i32, i32, i32) {
    %c0_i32 = arith.constant 0 : i32
    %c0_i32_0 = arith.constant 0 : i32
    %c0_i32_1 = arith.constant 0 : i32
    %c0_i32_2 = arith.constant 0 : i32
    return %c0_i32, %c0_i32_0, %c0_i32_1 : i32, i32, i32
  }
  func.func @transform_2(%arg0: i32) -> (i32, i32) {
    %c0_i32 = arith.constant 0 : i32
    %c0_i32_0 = arith.constant 0 : i32
    %c0_i32_1 = arith.constant 0 : i32
    return %c0_i32, %c0_i32_0 : i32, i32
  }
  func.func @transform_3(%arg0: i32) -> (i32, i32) {
    %c0_i32 = arith.constant 0 : i32
    %c0_i32_0 = arith.constant 0 : i32
    return %arg0, %c0_i32 : i32, i32
  }
}

</mosaic_0001>

<bundles_post_ra>
// kernel: actor_forward.1
= control target key start
LH: loop header
LB: loop body
LE: loop exit
PB: predicated region body
PF: predicated region fallthrough
CT: control target
= control target key end

     0   :  { %v4029_v0 = vmov 1   ;;  %v4030_v7 = vmov 0   ;;  %vm636_vm0 = vcmask 1040384   ;;  %v246_v52 = vlaneseq  ;;  %s5540_s0 = inlined_call_operand.vmem [shape: f32[512,2], index: 0, kind: input, shape index: {}]   ;;  %s5541_s1 = inlined_call_operand.vmem [shape: bf16[5,50,50], index: 1, kind: input, shape index: {}]   ;;  %s5542_s2 = inlined_call_operand.vmem [shape: f32[5,50], index: 2, kind: input, shape index: {}]   ;;  %s5543_s3 = inlined_call_operand.vmem [shape: f32[512,4], index: 3, kind: output, shape index: {}]  }
   0x1   :  { %3936 = vset.pattern.permute.xlu0 %v4029_v0  ;;  %3934 = vset.pattern.permute.xlu1 %v4029_v0  ;;  %v56_v1 = vld [vmem:[%s5540_s0 + $0x10] sm:$0xff]  ;;  %v54_v2 = vld [vmem:[%s5540_s0] sm:$0xff]  ;;  %v55_v4 = vld [vmem:[%s5540_s0 + $0x8] sm:$0xff]  ;;  %vm587_vm1 = vcmask 408576   ;;  %vm1656_vm2 = vcmask 31744  }
   0x2   :  { %291 = vperm.xlu0 %3936, %v56_v1   ;;  %283 = vperm.xlu1 %3934, %v54_v2   ;;  %v60_v3 = vld [vmem:[%s5540_s0 + $0x30] sm:$0xff]  ;;  %v57_v6 = vld [vmem:[%s5540_s0 + $0x18] sm:$0xff]  ;;  %v58_v10 = vld [vmem:[%s5540_s0 + $0x20] sm:$0xff]  ;;  %v247_v55 = vshrl.u32 %v246_v52, 7 }
   0x3   :  { %v64_v5 = vld [vmem:[%s5540_s0 + $0x50] sm:$0xff]  ;;  %v59_v13 = vld [vmem:[%s5540_s0 + $0x28] sm:$0xff]  ;;  %v61_v17 = vld [vmem:[%s5540_s0 + $0x38] sm:$0xff] }
   0x4   :  { %v68_v8 = vld [vmem:[%s5540_s0 + $0x70] sm:$0xff]  ;;  %v4004_v18 = vld [vmem:[%s5541_s1 + $0x24] sm:$0xff]   ;;  %v4005_v19 = vld [vmem:[%s5541_s1 + $0x1c] sm:$0xff]   ;;  %v412_v61 = vsub.s32 1, %v247_v55  ;;  %v248_v62 = vsub.s32 0, %v247_v55 }
   0x5   :  { %v72_v9 = vld [vmem:[%s5540_s0 + $0x90] sm:$0xff]  ;;  %v62_v20 = vld [vmem:[%s5540_s0 + $0x40] sm:$0xff]  ;;  %v63_v21 = vld [vmem:[%s5540_s0 + $0x48] sm:$0xff] }
   0x6   :  { %307 = vperm.xlu0 %3936, %v60_v3   ;;  %287 = vperm.xlu1 %3934, %v55_v4   ;;  %v76_v11 = vld [vmem:[%s5540_s0 + $0xb0] sm:$0xff]  ;;  %v67_v22 = vld [vmem:[%s5540_s0 + $0x68] sm:$0xff]  ;;  %v65_v23 = vld [vmem:[%s5540_s0 + $0x58] sm:$0xff] }
   0x7   :  { %v4089_v12 = vld [vmem:[%s5540_s0 + $0xd0] sm:$0xff]  ;;  %v71_v24 = vld [vmem:[%s5540_s0 + $0x88] sm:$0xff]  ;;  %v66_v25 = vld [vmem:[%s5540_s0 + $0x60] sm:$0xff] }
   0x8   :  { %v4002_v14 = vld [vmem:[%s5541_s1 + $0x34] ss:$0 sps:$4 sm:$0x11]   ;;  %v4003_v16 = vld [vmem:[%s5541_s1 + $0x2c] sm:$0xff]   ;;  %v69_v28 = vld [vmem:[%s5540_s0 + $0x78] sm:$0xff] }
   0x9   :  { %3924 = vmatprep.subr.msk.bf16.mxu0 %vm636_vm0, %v4002_v14  ;;  %v4101_v15 = vsel %vm636_vm0, %v4002_v14, 0  ;;  %v75_v26 = vld [vmem:[%s5540_s0 + $0xa8] sm:$0xff]  ;;  %v70_v30 = vld [vmem:[%s5540_s0 + $0x80] sm:$0xff]  ;;  %v84_v31 = vld [vmem:[%s5540_s0 + $0xf0] sm:$0xff] }
   0xa   :  { %323 = vperm.xlu0 %3936, %v64_v5   ;;  %3935 = vset.pattern.permute.xlu1 %v4030_v7  ;;  %v4149_v27 = vld [vmem:[%s5540_s0 + $0xc8] sm:$0xff]  ;;  %v3318_v32 = vld [vmem:[%s5540_s0 + $0x110] sm:$0xff]  ;;  %v73_v33 = vld [vmem:[%s5540_s0 + $0x98] sm:$0xff] }
   0xb   :  { %103 = vperm.xlu1 %3935, %v57_v6   ;;  %3605 = vmatpush3.bf16.msra.mxu0 %v4101_v15  ;;  %v4161_v29 = vld [vmem:[%s5540_s0 + $0xe8] sm:$0xff]  ;;  %v3322_v34 = vld [vmem:[%s5540_s0 + $0x130] sm:$0xff]  ;;  %v74_v37 = vld [vmem:[%s5540_s0 + $0xa0] sm:$0xff] }
   0xc   :  { %3606 = vmatprep.subr.bf16.mxu0 %v4003_v16  ;;  %v3326_v35 = vld [vmem:[%s5540_s0 + $0x150] sm:$0xff]  ;;  %v77_v43 = vld [vmem:[%s5540_s0 + $0xb8] sm:$0xff]  ;;  %v4227_v46 = vld [vmem:[%s5540_s0 + $0x108] sm:$0xff] }
   0xd   :  { %v4190_v36 = vld [vmem:[%s5540_s0 + $0x170] sm:$0xff]  ;;  %v4239_v50 = vld [vmem:[%s5540_s0 + $0x128] sm:$0xff]  ;;  %v78_v51 = vld [vmem:[%s5540_s0 + $0xc0] sm:$0xff] }
   0xe   :  { %339 = vperm.xlu0 %3936, %v68_v8   ;;  %v4200_v38 = vld [vmem:[%s5540_s0 + $0x190] sm:$0xff]  ;;  %v15_v56 = vld [vmem:[%s5541_s1] sm:$0xf]  ;;  %v4257_v59 = vld [vmem:[%s5540_s0 + $0x148] sm:$0xff] }
   0xf   :  { %3937 = vset.pattern.permute.xlu1 %v4029_v0  ;;  %3607 = vmatpush3.bf16.msra.mxu0 %v4003_v16  ;;  %v4207_v39 = vld [vmem:[%s5540_s0 + $0x1b0] sm:$0xff]  ;;  %v16_v60 = vunpack.c.l.bf16 %v15_v56 }
  0x10   :  { %295 = vperm.xlu1 %3937, %v57_v6   ;;  %3608 = vmatprep.subr.bf16.mxu0 %v4004_v18  ;;  %v4215_v42 = vld [vmem:[%s5540_s0 + $0x1d0] sm:$0xff] }
  0x12   :  { %355 = vperm.xlu0 %3936, %v72_v9  }
  0x13   :  { %3609 = vmatpush3.bf16.msra.mxu0 %v4004_v18 }
  0x14   :  { %3938 = vset.pattern.permute.xlu1 %v4030_v7  ;;  %3610 = vmatprep.subr.bf16.mxu0 %v4005_v19 }
  0x15   :  { %108 = vperm.xlu1 %3938, %v58_v10  }
  0x16   :  { %371 = vperm.xlu0 %3936, %v76_v11  }
  0x17   :  { %3611 = vmatpush3.bf16.msra.mxu0 %v4005_v19  ;;  %v4287_v19 = vld [vmem:[%s5542_s2] ss:$0 sm:$0xff] }
  0x19   :  { %3939 = vset.pattern.permute.xlu1 %v4029_v0 }
  0x1a   :  { %387 = vperm.xlu0 %3936, %v4089_v12   ;;  %299 = vperm.xlu1 %3939, %v58_v10  }
  0x1e   :  { %3961 = vset.pattern.permute.xlu0 %v4030_v7  ;;  %303 = vperm.xlu1 %3939, %v59_v13  }
  0x1f   :  { %88 = vperm.xlu0 %3961, %v54_v2   ;;  %v4263_v2 = vrot.slane %v16_v60, %v412_v61 }
  0x22   :  { %3940 = vset.pattern.permute.xlu1 %v4030_v7 }
  0x23   :  { %93 = vperm.xlu0 %3961, %v55_v4   ;;  %123 = vperm.xlu1 %3940, %v61_v17   ;;  %v4268_v4 = vrot.slane %v16_v60, %v248_v62 }
  0x27   :  { %98 = vperm.xlu0 %3961, %v56_v1   ;;  %3941 = vset.pattern.permute.xlu1 %v4029_v0 }
  0x28   :  { %311 = vperm.xlu1 %3941, %v61_v17  }
  0x2b   :  { %113 = vperm.xlu0 %3961, %v59_v13  }
  0x2c   :  { %3942 = vset.pattern.permute.xlu1 %v4030_v7 }
  0x2d   :  { %128 = vperm.xlu1 %3942, %v62_v20  }
  0x2f   :  { %118 = vperm.xlu0 %3961, %v60_v3   ;;  %v81_v3 = vld [vmem:[%s5540_s0 + $0xd8] sm:$0xff] }
  0x31   :  { %3943 = vset.pattern.permute.xlu1 %v4029_v0 }
  0x32   :  { %315 = vperm.xlu1 %3943, %v62_v20  }
  0x33   :  { %133 = vperm.xlu0 %3961, %v63_v21  }
  0x36   :  { %319 = vperm.xlu1 %3943, %v63_v21  }
  0x37   :  { %138 = vperm.xlu0 %3961, %v64_v5  }
  0x3a   :  { %3944 = vset.pattern.permute.xlu1 %v4030_v7 }
  0x3b   :  { %153 = vperm.xlu0 %3961, %v67_v22   ;;  %143 = vperm.xlu1 %3944, %v65_v23  }
  0x3f   :  { %158 = vperm.xlu0 %3961, %v68_v8   ;;  %3945 = vset.pattern.permute.xlu1 %v4029_v0  ;;  %v4274_v8 = vld [vmem:[%s5540_s0 + $0x168] sm:$0xff] }
  0x40   :  { %327 = vperm.xlu1 %3945, %v65_v23  }
  0x43   :  { %173 = vperm.xlu0 %3961, %v71_v24  }
  0x44   :  { %3946 = vset.pattern.permute.xlu1 %v4030_v7 }
  0x45   :  { %148 = vperm.xlu1 %3946, %v66_v25  }
  0x47   :  { %178 = vperm.xlu0 %3961, %v72_v9  }
  0x49   :  { %3947 = vset.pattern.permute.xlu1 %v4029_v0 }
  0x4a   :  { %331 = vperm.xlu1 %3947, %v66_v25  }
  0x4b   :  { %193 = vperm.xlu0 %3961, %v75_v26  }
  0x4e   :  { %335 = vperm.xlu1 %3947, %v67_v22  }
  0x4f   :  { %198 = vperm.xlu0 %3961, %v76_v11  }
  0x52   :  { %3948 = vset.pattern.permute.xlu1 %v4030_v7 }
  0x53   :  { %213 = vperm.xlu0 %3961, %v4149_v27   ;;  %163 = vperm.xlu1 %3948, %v69_v28  }
  0x57   :  { %218 = vperm.xlu0 %3961, %v4089_v12   ;;  %3949 = vset.pattern.permute.xlu1 %v4029_v0 }
  0x58   :  { %343 = vperm.xlu1 %3949, %v69_v28   ;;  %v82_v28 = vld [vmem:[%s5540_s0 + $0xe0] sm:$0xff] }
  0x5b   :  { %233 = vperm.xlu0 %3961, %v4161_v29  }
  0x5c   :  { %3950 = vset.pattern.permute.xlu1 %v4030_v7 }
  0x5d   :  { %168 = vperm.xlu1 %3950, %v70_v30  }
  0x5f   :  { %238 = vperm.xlu0 %3961, %v84_v31  }
  0x61   :  { %3951 = vset.pattern.permute.xlu1 %v4029_v0 }
  0x62   :  { %347 = vperm.xlu1 %3951, %v70_v30  }
  0x63   :  { %3966 = vset.pattern.permute.xlu0 %v4029_v0 }
  0x64   :  { %403 = vperm.xlu0 %3966, %v84_v31  }
  0x66   :  { %351 = vperm.xlu1 %3951, %v71_v24  }
  0x68   :  { %1923 = vperm.xlu0 %3966, %v3318_v32  }
  0x6a   :  { %3952 = vset.pattern.permute.xlu1 %v4030_v7 }
  0x6b   :  { %183 = vperm.xlu1 %3952, %v73_v33  }
  0x6c   :  { %1939 = vperm.xlu0 %3966, %v3322_v34  }
  0x6f   :  { %3953 = vset.pattern.permute.xlu1 %v4029_v0 }
  0x70   :  { %1955 = vperm.xlu0 %3966, %v3326_v35   ;;  %359 = vperm.xlu1 %3953, %v73_v33  }
  0x74   :  { %1971 = vperm.xlu0 %3966, %v4190_v36   ;;  %3954 = vset.pattern.permute.xlu1 %v4030_v7 }
  0x75   :  { %188 = vperm.xlu1 %3954, %v74_v37  }
  0x78   :  { %1987 = vperm.xlu0 %3966, %v4200_v38  }
  0x79   :  { %3955 = vset.pattern.permute.xlu1 %v4029_v0 }
  0x7a   :  { %363 = vperm.xlu1 %3955, %v74_v37  }
  0x7c   :  { %2003 = vperm.xlu0 %3966, %v4207_v39  }
  0x7d   :  { %v284_v40 = vpop.permute.xlu1 %283  ;;  %v4210_v41 = vpop.permute.xlu0 %291 }
  0x7e   :  { %367 = vperm.xlu1 %3955, %v75_v26   ;;  %v414_v9 = vmul.f32 %v4263_v2, %v284_v40  ;;  %v416_v22 = vmul.f32 %v4263_v2, %v4210_v41 }
  0x80   :  { %2019 = vperm.xlu0 %3966, %v4215_v42  }
  0x81   :  { %v288_v44 = vpop.permute.xlu1 %287  ;;  %v4221_v45 = vpop.permute.xlu0 %307 }
  0x82   :  { %3956 = vset.pattern.permute.xlu1 %v4030_v7  ;;  %v415_v17 = vmul.f32 %v4263_v2, %v288_v44 }
  0x83   :  { %203 = vperm.xlu1 %3956, %v77_v43  }
  0x84   :  { %3995 = vset.pattern.permute.xlu0 %v4030_v7 }
  0x85   :  { %1729 = vperm.xlu0 %3995, %v4227_v46   ;;  %v4231_v47 = vpop.permute.xlu0 %323 }
  0x86   :  { %v104_v48 = vpop.permute.xlu1 %103 }
  0x87   :  { %3957 = vset.pattern.permute.xlu1 %v4029_v0  ;;  %v253_v13 = vmul.f32 %v4268_v4, %v104_v48 }
  0x88   :  { %375 = vperm.xlu1 %3957, %v77_v43  }
  0x89   :  { %1734 = vperm.xlu0 %3995, %v3318_v32   ;;  %v4234_v49 = vpop.permute.xlu0 %339 }
  0x8b   :  { %v296_v53 = vpop.permute.xlu1 %295 }
  0x8c   :  { %3958 = vset.pattern.permute.xlu1 %v4030_v7  ;;  %v417_v11 = vmul.f32 %v4263_v2, %v296_v53  ;;  %v420_v53 = vmul.f32 %v4263_v2, %v4221_v45 }
  0x8d   :  { %1749 = vperm.xlu0 %3995, %v4239_v50   ;;  %208 = vperm.xlu1 %3958, %v78_v51   ;;  %v4246_v54 = vpop.permute.xlu0 %355 }
  0x8e   :  { %v449_v20 = vadd.f32 %v417_v11, %v253_v13 }
  0x90   :  { %v109_v57 = vpop.permute.xlu1 %108  ;;  %v485_v33 = vadd.f32 %v4287_v19, %v449_v20 }
  0x91   :  { %1754 = vperm.xlu0 %3995, %v3322_v34   ;;  %3959 = vset.pattern.permute.xlu1 %v4029_v0  ;;  %v4252_v58 = vpop.permute.xlu0 %371  ;;  %v254_v25 = vmul.f32 %v4268_v4, %v109_v57 }
  0x92   :  { %379 = vperm.xlu1 %3959, %v78_v51   ;;  %v517_v55 = vmax.f32 %v485_v33, 0.0 }
  0x95   :  { %1769 = vperm.xlu0 %3995, %v4257_v59   ;;  %v300_v63 = vpop.permute.xlu1 %299  ;;  %v4260_v1 = vpop.permute.xlu0 %387 }
  0x96   :  { %383 = vperm.xlu1 %3959, %v4149_v27   ;;  %v418_v21 = vmul.f32 %v4263_v2, %v300_v63  ;;  %v4298_v27 = vld [vmem:[%s5540_s0 + $0x188] sm:$0xff] }
  0x98   :  { %v450_v34 = vadd.f32 %v418_v21, %v254_v25 }
  0x99   :  { %1774 = vperm.xlu0 %3995, %v3326_v35   ;;  %v304_v5 = vpop.permute.xlu1 %303 }
  0x9a   :  { %v89_v6 = vpop.permute.xlu0 %88  ;;  %3960 = vset.pattern.permute.xlu1 %v4030_v7  ;;  %v419_v41 = vmul.f32 %v4263_v2, %v304_v5  ;;  %v486_v57 = vadd.f32 %v4287_v19, %v450_v34 }
  0x9b   :  { %v250_v10 = vmul.f32 %v4268_v4, %v89_v6  ;;  %223 = vperm.xlu1 %3960, %v81_v3  }
  0x9d   :  { %v446_v12 = vadd.f32 %v414_v9, %v250_v10  ;;  %1789 = vperm.xlu0 %3995, %v4274_v8   ;;  %v518_v9 = vmax.f32 %v486_v57, 0.0 }
  0x9e   :  { %v94_v14 = vpop.permute.xlu0 %93  ;;  %v124_v16 = vpop.permute.xlu1 %123 }
  0x9f   :  { %v251_v18 = vmul.f32 %v4268_v4, %v94_v14  ;;  %3962 = vset.pattern.permute.xlu1 %v4029_v0  ;;  %v482_v24 = vadd.f32 %v4287_v19, %v446_v12  ;;  %v257_v44 = vmul.f32 %v4268_v4, %v124_v16 }
  0xa0   :  { %391 = vperm.xlu1 %3962, %v81_v3   ;;  %v4322_v3 = vld [vmem:[%s5540_s0 + $0x1a8] sm:$0xff] }
  0xa1   :  { %v447_v23 = vadd.f32 %v415_v17, %v251_v18  ;;  %1794 = vperm.xlu0 %3995, %v4190_v36   ;;  %v514_v37 = vmax.f32 %v482_v24, 0.0 }
  0xa2   :  { %v99_v26 = vpop.permute.xlu0 %98 }
  0xa3   :  { %v252_v30 = vmul.f32 %v4268_v4, %v99_v26  ;;  %v312_v31 = vpop.permute.xlu1 %311  ;;  %v483_v32 = vadd.f32 %v4287_v19, %v447_v23 }
  0xa4   :  { %3963 = vset.pattern.permute.xlu1 %v4030_v7  ;;  %v421_v36 = vmul.f32 %v4263_v2, %v312_v31  ;;  %v424_v31 = vmul.f32 %v4263_v2, %v4231_v47 }
  0xa5   :  { %v448_v35 = vadd.f32 %v416_v22, %v252_v30  ;;  %1809 = vperm.xlu0 %3995, %v4298_v27   ;;  %228 = vperm.xlu1 %3963, %v82_v28   ;;  %v515_v40 = vmax.f32 %v483_v32, 0.0  ;;  %v85_v22 = vld [vmem:[%s5540_s0 + $0xf8] sm:$0xff] }
  0xa6   :  { %v114_v43 = vpop.permute.xlu0 %113  ;;  %v453_v61 = vadd.f32 %v421_v36, %v257_v44 }
  0xa7   :  { %v484_v48 = vadd.f32 %v4287_v19, %v448_v35  ;;  %v255_v51 = vmul.f32 %v4268_v4, %v114_v43  ;;  %v546_v52 = vpack.c.bf16 %v515_v40, %v514_v37 }
  0xa8   :  { %v129_v56 = vpop.permute.xlu1 %128  ;;  %v489_v10 = vadd.f32 %v4287_v19, %v453_v61 }
  0xa9   :  { %v516_v60 = vmax.f32 %v484_v48, 0.0  ;;  %v451_v62 = vadd.f32 %v419_v41, %v255_v51  ;;  %1814 = vperm.xlu0 %3995, %v4200_v38   ;;  %3964 = vset.pattern.permute.xlu1 %v4029_v0  ;;  %v258_v13 = vmul.f32 %v4268_v4, %v129_v56  ;;  %v3316_v41 = vld [vmem:[%s5540_s0 + $0x100] sm:$0xff] }
  0xaa   :  { %3612 = vmatprep.mubr.msk.bf16.mxu0 %vm587_vm1, %v546_v52  ;;  %v119_v63 = vpop.permute.xlu0 %118  ;;  %395 = vperm.xlu1 %3964, %v82_v28   ;;  %v521_v23 = vmax.f32 %v489_v10, 0.0 }
  0xab   :  { %v547_v45 = vpack.c.bf16 %v517_v55, %v516_v60  ;;  %v487_v5 = vadd.f32 %v4287_v19, %v451_v62  ;;  %v256_v6 = vmul.f32 %v4268_v4, %v119_v63 }
  0xad   :  { %v519_v38 = vmax.f32 %v487_v5, 0.0  ;;  %v452_v11 = vadd.f32 %v420_v53, %v256_v6  ;;  %1829 = vperm.xlu0 %3995, %v4322_v3   ;;  %3613 = vmatmul.mubr.msk.bf16.vlgmr.msra.gmra.mxu0 %vm587_vm1, %v547_v45  ;;  %v316_v12 = vpop.permute.xlu1 %315  ;;  %v3319_v6 = vld [vmem:[%s5540_s0 + $0x118] sm:$0xff] }
  0xae   :  { %v422_v14 = vmul.f32 %v4263_v2, %v316_v12  ;;  %v134_v16 = vpop.permute.xlu0 %133  ;;  %399 = vperm.xlu1 %3964, %v4161_v29   ;;  %v4344_v29 = vld [vmem:[%s5540_s0 + $0x1c8] sm:$0xff]  ;;  %v428_v12 = vmul.f32 %v4263_v2, %v4234_v49 }
  0xaf   :  { %v548_v17 = vpack.c.bf16 %v519_v38, %v518_v9  ;;  %v488_v18 = vadd.f32 %v4287_v19, %v452_v11  ;;  %v259_v21 = vmul.f32 %v4268_v4, %v134_v16 }
  0xb0   :  { %v454_v20 = vadd.f32 %v422_v14, %v258_v13 }
  0xb1   :  { %v520_v24 = vmax.f32 %v488_v18, 0.0  ;;  %1834 = vperm.xlu0 %3995, %v4207_v39   ;;  %3616 = vmatprep.mubr.msk.bf16.mxu0 %vm587_vm1, %v548_v17  ;;  %v320_v25 = vpop.permute.xlu1 %319 }
  0xb2   :  { %v423_v26 = vmul.f32 %v4263_v2, %v320_v25  ;;  %3965 = vset.pattern.permute.xlu1 %v4030_v7  ;;  %v139_v30 = vpop.permute.xlu0 %138  ;;  %v490_v39 = vadd.f32 %v4287_v19, %v454_v20 }
  0xb3   :  { %v549_v28 = vpack.c.bf16 %v521_v23, %v520_v24  ;;  %243 = vperm.xlu1 %3965, %v85_v22   ;;  %v260_v33 = vmul.f32 %v4268_v4, %v139_v30 }
  0xb4   :  { %v455_v32 = vadd.f32 %v423_v26, %v259_v21  ;;  %v522_v36 = vmax.f32 %v490_v39, 0.0 }
  0xb5   :  { %1849 = vperm.xlu0 %3995, %v4344_v29   ;;  %3617 = vmatmul.mubr.msk.bf16.gmra.mxu0 %vm587_vm1, %v549_v28  ;;  %v456_v40 = vadd.f32 %v424_v31, %v260_v33 }
  0xb6   :  { %v491_v34 = vadd.f32 %v4287_v19, %v455_v32  ;;  %v144_v35 = vpop.permute.xlu1 %143  ;;  %v154_v63 = vpop.permute.xlu0 %153 }
  0xb7   :  { %3967 = vset.pattern.permute.xlu1 %v4029_v0  ;;  %v492_v44 = vadd.f32 %v4287_v19, %v456_v40  ;;  %v261_v48 = vmul.f32 %v4268_v4, %v144_v35  ;;  %v263_v45 = vmul.f32 %v4268_v4, %v154_v63 }
  0xb8   :  { %v523_v37 = vmax.f32 %v491_v34, 0.0  ;;  %407 = vperm.xlu1 %3967, %v85_v22   ;;  %v3320_v22 = vld [vmem:[%s5540_s0 + $0x120] sm:$0xff] }
  0xb9   :  { %1854 = vperm.xlu0 %3995, %v4215_v42   ;;  %v524_v53 = vmax.f32 %v492_v44, 0.0 }
  0xba   :  { %v550_v47 = vpack.c.bf16 %v523_v37, %v522_v36 }
  0xbb   :  { %v328_v43 = vpop.permute.xlu1 %327 }
  0xbc   :  { %v425_v51 = vmul.f32 %v4263_v2, %v328_v43  ;;  %3968 = vset.pattern.permute.xlu1 %v4030_v7  ;;  %3620 = vmatprep.mubr.msk.bf16.mxu0 %vm587_vm1, %v550_v47  ;;  %v3323_v47 = vld [vmem:[%s5540_s0 + $0x138] sm:$0xff] }
  0xbd   :  { %1724 = vperm.xlu1 %3968, %v3316_v41  }
  0xbe   :  { %v457_v52 = vadd.f32 %v425_v51, %v261_v48  ;;  %v432_v51 = vmul.f32 %v4263_v2, %v4246_v54  ;;  %v4413_v54 = vld [vmem:[%s5541_s1 + $0x50] ss:$0 sps:$4 sm:$0x11]  }
  0xbf   :  { %3925 = vmatprep.subr.msk.bf16.mxu1 %vm636_vm0, %v4413_v54 }
  0xc0   :  { %v493_v42 = vadd.f32 %v4287_v19, %v457_v52  ;;  %v149_v55 = vpop.permute.xlu1 %148 }
  0xc1   :  { %3969 = vset.pattern.permute.xlu1 %v4029_v0  ;;  %v262_v61 = vmul.f32 %v4268_v4, %v149_v55 }
  0xc2   :  { %v525_v56 = vmax.f32 %v493_v42, 0.0  ;;  %1915 = vperm.xlu1 %3969, %v3316_v41  }
  0xc4   :  { %v551_v57 = vpack.c.bf16 %v525_v56, %v524_v53 }
  0xc5   :  { %v332_v60 = vpop.permute.xlu1 %331 }
  0xc6   :  { %v426_v62 = vmul.f32 %v4263_v2, %v332_v60  ;;  %1919 = vperm.xlu1 %3969, %v4227_v46   ;;  %3621 = vmatmul.mubr.msk.bf16.gmra.mxu0 %vm587_vm1, %v551_v57  ;;  %v159_v46 = vpop.permute.xlu0 %158 }
  0xc7   :  { %v264_v13 = vmul.f32 %v4268_v4, %v159_v46 }
  0xc8   :  { %v458_v5 = vadd.f32 %v426_v62, %v262_v61  ;;  %v3324_v61 = vld [vmem:[%s5540_s0 + $0x140] sm:$0xff] }
  0xc9   :  { %v336_v9 = vpop.permute.xlu1 %335  ;;  %v460_v20 = vadd.f32 %v428_v12, %v264_v13 }
  0xca   :  { %v427_v10 = vmul.f32 %v4263_v2, %v336_v9  ;;  %3970 = vset.pattern.permute.xlu1 %v4030_v7  ;;  %v494_v38 = vadd.f32 %v4287_v19, %v458_v5  ;;  %v174_v36 = vpop.permute.xlu0 %173  ;;  %v4421_v5 = vsel %vm636_vm0, %v4413_v54, 0 }
  0xcb   :  { %1739 = vperm.xlu1 %3970, %v3319_v6   ;;  %v496_v25 = vadd.f32 %v4287_v19, %v460_v20  ;;  %v267_v37 = vmul.f32 %v4268_v4, %v174_v36  ;;  %3645 = vmatpush3.bf16.msra.mxu1 %v4421_v5 }
  0xcc   :  { %v459_v11 = vadd.f32 %v427_v10, %v263_v45  ;;  %v526_v17 = vmax.f32 %v494_v38, 0.0  ;;  %v4007_v38 = vld [vmem:[%s5541_s1 + $0x48] sm:$0xff]  }
  0xcd   :  { %v528_v31 = vmax.f32 %v496_v25, 0.0  ;;  %3646 = vmatprep.subr.bf16.mxu1 %v4007_v38 }
  0xce   :  { %v495_v14 = vadd.f32 %v4287_v19, %v459_v11  ;;  %v164_v16 = vpop.permute.xlu1 %163 }
  0xcf   :  { %3971 = vset.pattern.permute.xlu1 %v4029_v0  ;;  %v265_v24 = vmul.f32 %v4268_v4, %v164_v16  ;;  %3647 = vmatpush3.bf16.msra.mxu1 %v4007_v38 }
  0xd0   :  { %v527_v18 = vmax.f32 %v495_v14, 0.0  ;;  %1927 = vperm.xlu1 %3971, %v3319_v6   ;;  %v4008_v14 = vld [vmem:[%s5541_s1 + $0x40] sm:$0xff]  }
  0xd1   :  { %3648 = vmatprep.subr.bf16.mxu1 %v4008_v14 }
  0xd2   :  { %v552_v21 = vpack.c.bf16 %v527_v18, %v526_v17 }
  0xd3   :  { %v344_v23 = vpop.permute.xlu1 %343  ;;  %3649 = vmatpush3.bf16.msra.mxu1 %v4008_v14 }
  0xd4   :  { %v429_v49 = vmul.f32 %v4263_v2, %v344_v23  ;;  %3972 = vset.pattern.permute.xlu1 %v4030_v7  ;;  %3624 = vmatprep.mubr.msk.bf16.mxu0 %vm587_vm1, %v552_v21 }
  0xd5   :  { %1744 = vperm.xlu1 %3972, %v3320_v22  }
  0xd6   :  { %v461_v26 = vadd.f32 %v429_v49, %v265_v24  ;;  %v3327_v24 = vld [vmem:[%s5540_s0 + $0x158] sm:$0xff] }
  0xd8   :  { %v497_v28 = vadd.f32 %v4287_v19, %v461_v26  ;;  %v169_v30 = vpop.permute.xlu1 %168 }
  0xd9   :  { %3973 = vset.pattern.permute.xlu1 %v4029_v0  ;;  %v266_v34 = vmul.f32 %v4268_v4, %v169_v30 }
  0xda   :  { %v529_v39 = vmax.f32 %v497_v28, 0.0  ;;  %1931 = vperm.xlu1 %3973, %v3320_v22   ;;  %v4009_v22 = vld [vmem:[%s5541_s1 + $0x38] sm:$0xff]  }
  0xdb   :  { %3650 = vmatprep.subr.bf16.mxu1 %v4009_v22 }
  0xdc   :  { %v553_v32 = vpack.c.bf16 %v529_v39, %v528_v31  ;;  %3651 = vmatpush3.bf16.msra.mxu1 %v4009_v22  ;;  %v436_v31 = vmul.f32 %v4263_v2, %v4252_v58 }
  0xdd   :  { %v348_v33 = vpop.permute.xlu1 %347 }
  0xde   :  { %v430_v35 = vmul.f32 %v4263_v2, %v348_v33  ;;  %1935 = vperm.xlu1 %3973, %v4239_v50   ;;  %3625 = vmatmul.mubr.msk.bf16.gmra.mxu0 %vm587_vm1, %v553_v32  ;;  %v179_v50 = vpop.permute.xlu0 %178 }
  0xdf   :  { %v268_v52 = vmul.f32 %v4268_v4, %v179_v50 }
  0xe0   :  { %v462_v40 = vadd.f32 %v430_v35, %v266_v34 }
  0xe1   :  { %v352_v41 = vpop.permute.xlu1 %351  ;;  %v464_v57 = vadd.f32 %v432_v51, %v268_v52 }
  0xe2   :  { %v431_v43 = vmul.f32 %v4263_v2, %v352_v41  ;;  %3974 = vset.pattern.permute.xlu1 %v4030_v7  ;;  %v498_v44 = vadd.f32 %v4287_v19, %v462_v40  ;;  %v194_v6 = vpop.permute.xlu0 %193 }
  0xe3   :  { %1759 = vperm.xlu1 %3974, %v3323_v47   ;;  %v500_v9 = vadd.f32 %v4287_v19, %v464_v57  ;;  %v271_v26 = vmul.f32 %v4268_v4, %v194_v6 }
  0xe4   :  { %v463_v48 = vadd.f32 %v431_v43, %v267_v37  ;;  %v530_v55 = vmax.f32 %v498_v44, 0.0 }
  0xe5   :  { %v532_v12 = vmax.f32 %v500_v9, 0.0 }
  0xe6   :  { %v499_v53 = vadd.f32 %v4287_v19, %v463_v48  ;;  %v184_v42 = vpop.permute.xlu1 %183  ;;  %v199_v16 = vpop.permute.xlu0 %198 }
  0xe7   :  { %3975 = vset.pattern.permute.xlu1 %v4029_v0  ;;  %v269_v63 = vmul.f32 %v4268_v4, %v184_v42  ;;  %v272_v39 = vmul.f32 %v4268_v4, %v199_v16 }
  0xe8   :  { %v531_v56 = vmax.f32 %v499_v53, 0.0  ;;  %1943 = vperm.xlu1 %3975, %v3323_v47   ;;  %v3328_v47 = vld [vmem:[%s5540_s0 + $0x160] sm:$0xff] }
  0xe9   :  { %v468_v37 = vadd.f32 %v436_v31, %v272_v39 }
  0xea   :  { %v554_v60 = vpack.c.bf16 %v531_v56, %v530_v55  ;;  %v214_v49 = vpop.permute.xlu0 %213 }
  0xeb   :  { %v360_v62 = vpop.permute.xlu1 %359  ;;  %v504_v48 = vadd.f32 %v4287_v19, %v468_v37  ;;  %v275_v9 = vmul.f32 %v4268_v4, %v214_v49  ;;  %v3335_v37 = vld [vmem:[%s5540_s0 + $0x198] sm:$0xff] }
  0xec   :  { %v433_v45 = vmul.f32 %v4263_v2, %v360_v62  ;;  %3976 = vset.pattern.permute.xlu1 %v4030_v7  ;;  %3628 = vmatprep.mubr.msk.bf16.mxu0 %vm587_vm1, %v554_v60 }
  0xed   :  { %1764 = vperm.xlu1 %3976, %v3324_v61   ;;  %v536_v42 = vmax.f32 %v504_v48, 0.0 }
  0xee   :  { %v465_v10 = vadd.f32 %v433_v45, %v269_v63  ;;  %v219_v34 = vpop.permute.xlu0 %218  ;;  %v3331_v45 = vld [vmem:[%s5540_s0 + $0x178] sm:$0xff] }
  0xf0   :  { %v501_v11 = vadd.f32 %v4287_v19, %v465_v10  ;;  %v189_v46 = vpop.permute.xlu1 %188 }
  0xf1   :  { %3977 = vset.pattern.permute.xlu1 %v4029_v0  ;;  %v270_v20 = vmul.f32 %v4268_v4, %v189_v46  ;;  %v440_v46 = vmul.f32 %v4263_v2, %v4260_v1 }
  0xf2   :  { %v533_v13 = vmax.f32 %v501_v11, 0.0  ;;  %1947 = vperm.xlu1 %3977, %v3324_v61   ;;  %v4457_v41 = vpop.permute.xlu0 %233 }
  0xf4   :  { %v555_v17 = vpack.c.bf16 %v533_v13, %v532_v12  ;;  %v276_v12 = vmul.f32 %v4268_v4, %v219_v34 }
  0xf5   :  { %v364_v18 = vpop.permute.xlu1 %363 }
  0xf6   :  { %v434_v21 = vmul.f32 %v4263_v2, %v364_v18  ;;  %1951 = vperm.xlu1 %3977, %v4257_v59   ;;  %3629 = vmatmul.mubr.msk.bf16.gmra.mxu0 %vm587_vm1, %v555_v17  ;;  %v4465_v53 = vpop.permute.xlu0 %238  ;;  %v472_v18 = vadd.f32 %v440_v46, %v276_v12 }
  0xf7   :  { %v280_v48 = vmul.f32 %v4268_v4, %v4465_v53 }
  0xf8   :  { %v466_v23 = vadd.f32 %v434_v21, %v270_v20  ;;  %v3332_v21 = vld [vmem:[%s5540_s0 + $0x180] sm:$0xff]  ;;  %v508_v49 = vadd.f32 %v4287_v19, %v472_v18 }
  0xf9   :  { %v368_v25 = vpop.permute.xlu1 %367 }
  0xfa   :  { %v435_v28 = vmul.f32 %v4263_v2, %v368_v25  ;;  %3978 = vset.pattern.permute.xlu1 %v4030_v7  ;;  %v502_v59 = vadd.f32 %v4287_v19, %v466_v23  ;;  %v404_v62 = vpop.permute.xlu0 %403 }
  0xfb   :  { %1779 = vperm.xlu1 %3978, %v3327_v24  }
  0xfc   :  { %v467_v30 = vadd.f32 %v435_v28, %v271_v26  ;;  %v534_v35 = vmax.f32 %v502_v59, 0.0 }
  0xfe   :  { %v503_v32 = vadd.f32 %v4287_v19, %v467_v30  ;;  %v204_v33 = vpop.permute.xlu1 %203  ;;  %v540_v30 = vmax.f32 %v508_v49, 0.0 }
  0xff   :  { %3979 = vset.pattern.permute.xlu1 %v4029_v0  ;;  %v273_v43 = vmul.f32 %v4268_v4, %v204_v33 }
 0x100   :  { %v535_v36 = vmax.f32 %v503_v32, 0.0  ;;  %1959 = vperm.xlu1 %3979, %v3327_v24  }
 0x102   :  { %v556_v40 = vpack.c.bf16 %v535_v36, %v534_v35 }
 0x103   :  { %v376_v58 = vpop.permute.xlu1 %375 }
 0x104   :  { %v437_v44 = vmul.f32 %v4263_v2, %v376_v58  ;;  %3980 = vset.pattern.permute.xlu1 %v4030_v7  ;;  %3632 = vmatprep.mubr.msk.bf16.mxu0 %vm587_vm1, %v556_v40 }
 0x105   :  { %1784 = vperm.xlu1 %3980, %v3328_v47  }
 0x106   :  { %v469_v50 = vadd.f32 %v437_v44, %v273_v43 }
 0x108   :  { %v505_v51 = vadd.f32 %v4287_v19, %v469_v50  ;;  %v209_v52 = vpop.permute.xlu1 %208  ;;  %v444_v50 = vmul.f32 %v4263_v2, %v404_v62 }
 0x109   :  { %3981 = vset.pattern.permute.xlu1 %v4029_v0  ;;  %v274_v60 = vmul.f32 %v4268_v4, %v209_v52 }
 0x10a   :  { %v537_v55 = vmax.f32 %v505_v51, 0.0  ;;  %1963 = vperm.xlu1 %3981, %v3328_v47   ;;  %v279_v47 = vmul.f32 %v4268_v4, %v4457_v41 }
 0x10c   :  { %v557_v56 = vpack.c.bf16 %v537_v55, %v536_v42  ;;  %v476_v55 = vadd.f32 %v444_v50, %v280_v48  ;;  %v3343_v48 = vld [vmem:[%s5540_s0 + $0x1d8] sm:$0xff] }
 0x10d   :  { %v380_v57 = vpop.permute.xlu1 %379 }
 0x10e   :  { %v438_v61 = vmul.f32 %v4263_v2, %v380_v57  ;;  %1967 = vperm.xlu1 %3981, %v4274_v8   ;;  %3633 = vmatmul.mubr.msk.bf16.gmra.mxu0 %vm587_vm1, %v557_v56  ;;  %v4479_v8 = vpop.permute.xlu0 %1923  ;;  %v3336_v57 = vld [vmem:[%s5540_s0 + $0x1a0] sm:$0xff] }
 0x110   :  { %v470_v63 = vadd.f32 %v438_v61, %v274_v60 }
 0x111   :  { %v384_v6 = vpop.permute.xlu1 %383 }
 0x112   :  { %v439_v10 = vmul.f32 %v4263_v2, %v384_v6  ;;  %3982 = vset.pattern.permute.xlu1 %v4030_v7  ;;  %v506_v38 = vadd.f32 %v4287_v19, %v470_v63  ;;  %v4489_v22 = vpop.permute.xlu0 %1939  ;;  %v512_v63 = vadd.f32 %v4287_v19, %v476_v55 }
 0x113   :  { %1799 = vperm.xlu1 %3982, %v3331_v45  }
 0x114   :  { %v471_v11 = vadd.f32 %v439_v10, %v275_v9  ;;  %v538_v16 = vmax.f32 %v506_v38, 0.0  ;;  %v544_v38 = vmax.f32 %v512_v63, 0.0 }
 0x116   :  { %v507_v13 = vadd.f32 %v4287_v19, %v471_v11  ;;  %v224_v14 = vpop.permute.xlu1 %223  ;;  %v4497_v59 = vpop.permute.xlu0 %1955 }
 0x117   :  { %3983 = vset.pattern.permute.xlu1 %v4029_v0  ;;  %v277_v1 = vmul.f32 %v4268_v4, %v224_v14 }
 0x118   :  { %v539_v17 = vmax.f32 %v507_v13, 0.0  ;;  %1975 = vperm.xlu1 %3983, %v3331_v45  }
 0x11a   :  { %v558_v20 = vpack.c.bf16 %v539_v17, %v538_v16  ;;  %v4504_v35 = vpop.permute.xlu0 %1971 }
 0x11b   :  { %v392_v23 = vpop.permute.xlu1 %391 }
 0x11c   :  { %v441_v24 = vmul.f32 %v4263_v2, %v392_v23  ;;  %3984 = vset.pattern.permute.xlu1 %v4030_v7  ;;  %3636 = vmatprep.mubr.msk.bf16.mxu0 %vm587_vm1, %v558_v20  ;;  %v3339_v20 = vld [vmem:[%s5540_s0 + $0x1b8] sm:$0xff] }
 0x11d   :  { %1804 = vperm.xlu1 %3984, %v3332_v21  }
 0x11e   :  { %v473_v25 = vadd.f32 %v441_v24, %v277_v1  ;;  %v4514_v44 = vpop.permute.xlu0 %1987 }
 0x120   :  { %v509_v26 = vadd.f32 %v4287_v19, %v473_v25  ;;  %v229_v28 = vpop.permute.xlu1 %228 }
 0x121   :  { %3985 = vset.pattern.permute.xlu1 %v4029_v0  ;;  %v278_v33 = vmul.f32 %v4268_v4, %v229_v28 }
 0x122   :  { %v541_v31 = vmax.f32 %v509_v26, 0.0  ;;  %1979 = vperm.xlu1 %3985, %v3332_v21   ;;  %v4524_v60 = vpop.permute.xlu0 %2003 }
 0x124   :  { %v559_v39 = vpack.c.bf16 %v541_v31, %v540_v30  ;;  %v3340_v31 = vld [vmem:[%s5540_s0 + $0x1c0] sm:$0xff] }
 0x125   :  { %v396_v32 = vpop.permute.xlu1 %395 }
 0x126   :  { %v442_v34 = vmul.f32 %v4263_v2, %v396_v32  ;;  %1983 = vperm.xlu1 %3985, %v4298_v27   ;;  %3637 = vmatmul.mubr.msk.bf16.gmra.mxu0 %vm587_vm1, %v559_v39  ;;  %v4532_v10 = vpop.permute.xlu0 %2019 }
 0x128   :  { %v474_v36 = vadd.f32 %v442_v34, %v278_v33 }
 0x129   :  { %v400_v40 = vpop.permute.xlu1 %399 }
 0x12a   :  { %v443_v58 = vmul.f32 %v4263_v2, %v400_v40  ;;  %3986 = vset.pattern.permute.xlu1 %v4030_v7  ;;  %v510_v27 = vadd.f32 %v4287_v19, %v474_v36  ;;  %v1730_v16 = vpop.permute.xlu0 %1729 }
 0x12b   :  { %1819 = vperm.xlu1 %3986, %v3335_v37   ;;  %v1883_v17 = vmul.f32 %v1730_v16, %v4268_v4 }
 0x12c   :  { %v475_v43 = vadd.f32 %v443_v58, %v279_v47  ;;  %v542_v41 = vmax.f32 %v510_v27, 0.0 }
 0x12e   :  { %v511_v51 = vadd.f32 %v4287_v19, %v475_v43  ;;  %v244_v52 = vpop.permute.xlu1 %243  ;;  %v4558_v36 = vpop.permute.xlu0 %1734 }
 0x12f   :  { %3987 = vset.pattern.permute.xlu1 %v4029_v0  ;;  %v281_v53 = vmul.f32 %v4268_v4, %v244_v52 }
 0x130   :  { %v543_v42 = vmax.f32 %v511_v51, 0.0  ;;  %1991 = vperm.xlu1 %3987, %v3335_v37  }
 0x132   :  { %v560_v56 = vpack.c.bf16 %v543_v42, %v542_v41  ;;  %v1750_v58 = vpop.permute.xlu0 %1749 }
 0x133   :  { %v408_v61 = vpop.permute.xlu1 %407  ;;  %v1887_v27 = vmul.f32 %v1750_v58, %v4268_v4 }
 0x134   :  { %v445_v62 = vmul.f32 %v4263_v2, %v408_v61  ;;  %3988 = vset.pattern.permute.xlu1 %v4030_v7  ;;  %3640 = vmatprep.mubr.msk.bf16.mxu0 %vm587_vm1, %v560_v56 }
 0x135   :  { %1824 = vperm.xlu1 %3988, %v3336_v57  }
 0x136   :  { %v477_v45 = vadd.f32 %v445_v62, %v281_v53 }
 0x138   :  { %v513_v6 = vadd.f32 %v4287_v19, %v477_v45  ;;  %v1725_v9 = vpop.permute.xlu1 %1724 }
 0x139   :  { %3989 = vset.pattern.permute.xlu1 %v4029_v0  ;;  %v1882_v12 = vmul.f32 %v1725_v9, %v4268_v4 }
 0x13a   :  { %v545_v11 = vmax.f32 %v513_v6, 0.0  ;;  %1995 = vperm.xlu1 %3989, %v3336_v57  }
 0x13c   :  { %v561_v46 = vpack.c.bf16 %v545_v11, %v544_v38 }
 0x13d   :  { %v1916_v13 = vpop.permute.xlu1 %1915 }
 0x13e   :  { %1999 = vperm.xlu1 %3989, %v4322_v3   ;;  %3641 = vmatmul.mubr.msk.bf16.gmra.mxu0 %vm587_vm1, %v561_v46  ;;  %v2042_v14 = vmul.f32 %v1916_v13, %v4263_v2  ;;  %v4585_v46 = vld [vmem:[%s5542_s2 + $0x1] ss:$0 sm:$0xff] }
 0x140   :  { %v2074_v18 = vadd.f32 %v2042_v14, %v1882_v12 }
 0x141   :  { %v1920_v21 = vpop.permute.xlu1 %1919 }
 0x142   :  { %v2106_v23 = vadd.f32 %v4287_v19, %v2074_v18  ;;  %3990 = vset.pattern.permute.xlu1 %v4030_v7  ;;  %v2043_v1 = vmul.f32 %v1920_v21, %v4263_v2 }
 0x143   :  { %1839 = vperm.xlu1 %3990, %v3339_v20  }
 0x144   :  { %v2075_v3 = vadd.f32 %v2043_v1, %v1883_v17  ;;  %v2138_v24 = vmax.f32 %v2106_v23, 0.0 }
 0x146   :  { %v2107_v49 = vadd.f32 %v4287_v19, %v2075_v3  ;;  %v1740_v25 = vpop.permute.xlu1 %1739 }
 0x147   :  { %3991 = vset.pattern.permute.xlu1 %v4029_v0  ;;  %v1885_v30 = vmul.f32 %v1740_v25, %v4268_v4 }
 0x148   :  { %v2139_v26 = vmax.f32 %v2107_v49, 0.0  ;;  %2007 = vperm.xlu1 %3991, %v3339_v20  }
 0x14a   :  { %v4548_v28 = vpack.c.bf16 %v2139_v26, %v2138_v24 }
 0x14b   :  { %v1928_v39 = vpop.permute.xlu1 %1927 }
 0x14c   :  { %v2045_v32 = vmul.f32 %v1928_v39, %v4263_v2  ;;  %3992 = vset.pattern.permute.xlu1 %v4030_v7 }
 0x14d   :  { %1844 = vperm.xlu1 %3992, %v3340_v31  }
 0x14e   :  { %v4556_v33 = vadd.f32 %v2045_v32, %v1885_v30 }
 0x150   :  { %v1745_v34 = vpop.permute.xlu1 %1744 }
 0x151   :  { %3993 = vset.pattern.permute.xlu1 %v4029_v0  ;;  %v1886_v37 = vmul.f32 %v1745_v34, %v4268_v4 }
 0x152   :  { %2011 = vperm.xlu1 %3993, %v3340_v31  }
 0x155   :  { %v1932_v40 = vpop.permute.xlu1 %1931 }
 0x156   :  { %2015 = vperm.xlu1 %3993, %v4344_v29   ;;  %v2046_v47 = vmul.f32 %v1932_v40, %v4263_v2 }
 0x158   :  { %v2078_v43 = vadd.f32 %v2046_v47, %v1886_v37 }
 0x159   :  { %v1936_v50 = vpop.permute.xlu1 %1935 }
 0x15a   :  { %v2110_v51 = vadd.f32 %v4287_v19, %v2078_v43  ;;  %3994 = vset.pattern.permute.xlu1 %v4030_v7  ;;  %v2047_v52 = vmul.f32 %v1936_v50, %v4263_v2 }
 0x15b   :  { %1859 = vperm.xlu1 %3994, %v3343_v48  }
 0x15c   :  { %v2079_v41 = vadd.f32 %v2047_v52, %v1887_v27  ;;  %v2142_v29 = vmax.f32 %v2110_v51, 0.0 }
 0x15e   :  { %v2111_v42 = vadd.f32 %v4287_v19, %v2079_v41  ;;  %v1760_v55 = vpop.permute.xlu1 %1759 }
 0x15f   :  { %3996 = vset.pattern.permute.xlu1 %v4029_v0  ;;  %v1889_v61 = vmul.f32 %v1760_v55, %v4268_v4 }
 0x160   :  { %v2143_v56 = vmax.f32 %v2111_v42, 0.0  ;;  %2023 = vperm.xlu1 %3996, %v3343_v48  }
 0x162   :  { %v4573_v57 = vpack.c.bf16 %v2143_v56, %v2142_v29  ;;  %v4607_v56 = vld [vmem:[%s5541_s1 + $0x6c] ss:$0 sps:$4 sm:$0x11]  }
 0x163   :  { %v1944_v53 = vpop.permute.xlu1 %1943  ;;  %3926 = vmatprep.subr.msk.bf16.mxu0 %vm636_vm0, %v4607_v56 }
 0x164   :  { %v2049_v62 = vmul.f32 %v1944_v53, %v4263_v2  ;;  %3997 = vset.pattern.permute.xlu1 %v4030_v7 }
 0x166   :  { %v4578_v63 = vadd.f32 %v2049_v62, %v1889_v61  ;;  %v4614_v62 = vsel %vm636_vm0, %v4607_v56, 0 }
 0x167   :  { %3685 = vmatpush3.bf16.msra.mxu0 %v4614_v62 }
 0x168   :  { %v1765_v45 = vpop.permute.xlu1 %1764 }
 0x169   :  { %v1890_v6 = vmul.f32 %v1765_v45, %v4268_v4 }
 0x16d   :  { %v3614_v19 = vpop.f32.mrf.mxu0  ;;  %v1948_v9 = vpop.permute.xlu1 %1947 }
 0x16e   :  { %v2050_v38 = vmul.f32 %v1948_v9, %v4263_v2  ;;  %v683_v17 = vadd.f32 %v3614_v19, %v4585_v46 }
 0x16f   :  { %v674_v11 = vpop.f32.mrf.mxu0 }
 0x170   :  { %v4587_v12 = vadd.f32 %v2050_v38, %v1890_v6  ;;  %v675_v14 = vadd.f32 %v4585_v46, %v674_v11  ;;  %v803_v24 = vmax.f32 %v683_v17, 0.0 }
 0x171   :  { %v3615_v13 = vpop.f32.mrf.mxu0 }
 0x172   :  { %v686_v16 = vadd.f32 %v3615_v13, %v4585_v46  ;;  %v801_v1 = vmax.f32 %v675_v14, 0.0 }
 0x173   :  { %v677_v18 = vpop.f32.mrf.mxu0 }
 0x174   :  { %v678_v20 = vadd.f32 %v4585_v46, %v677_v18  ;;  %v804_v21 = vmax.f32 %v686_v16, 0.0 }
 0x175   :  { %v3618_v23 = vpop.f32.mrf.mxu0 }
 0x176   :  { %v802_v3 = vmax.f32 %v678_v20, 0.0  ;;  %v834_v26 = vpack.c.bf16 %v804_v21, %v803_v24  ;;  %v699_v32 = vadd.f32 %v3618_v23, %v4585_v46 }
 0x177   :  { %v690_v49 = vpop.f32.mrf.mxu0 }
 0x178   :  { %v833_v25 = vpack.c.bf16 %v802_v3, %v801_v1  ;;  %v691_v31 = vadd.f32 %v4585_v46, %v690_v49  ;;  %v807_v27 = vmax.f32 %v699_v32, 0.0 }
 0x179   :  { %v3619_v30 = vpop.f32.mrf.mxu0 }
 0x17a   :  { %v702_v39 = vadd.f32 %v3619_v30, %v4585_v46  ;;  %3652 = vmatprep.mubr.msk.bf16.mxu1 %vm587_vm1, %v833_v25  ;;  %v805_v47 = vmax.f32 %v691_v31, 0.0 }
 0x17b   :  { %v693_v34 = vpop.f32.mrf.mxu0  ;;  %3653 = vmatmul.mubr.msk.bf16.vlgmr.msra.gmra.mxu1 %vm587_vm1, %v834_v26 }
 0x17c   :  { %v694_v37 = vadd.f32 %v4585_v46, %v693_v34  ;;  %v808_v40 = vmax.f32 %v702_v39, 0.0 }
 0x17e   :  { %v806_v58 = vmax.f32 %v694_v37, 0.0  ;;  %v836_v48 = vpack.c.bf16 %v808_v40, %v807_v27  ;;  %v4631_v40 = vld [vmem:[%s5541_s1 + $0x64] sm:$0xff]  }
 0x17f   :  { %3686 = vmatprep.subr.bf16.mxu0 %v4631_v40 }
 0x180   :  { %v835_v43 = vpack.c.bf16 %v806_v58, %v805_v47  ;;  %3687 = vmatpush3.bf16.msra.mxu0 %v4631_v40 }
 0x182   :  { %3656 = vmatprep.mubr.msk.bf16.mxu1 %vm587_vm1, %v835_v43 }
 0x183   :  { %3657 = vmatmul.mubr.msk.bf16.gmra.mxu1 %vm587_vm1, %v836_v48 }
 0x186   :  { %v3622_v50 = vpop.f32.mrf.mxu0 }
 0x187   :  { %v715_v42 = vadd.f32 %v3622_v50, %v4585_v46  ;;  %v3344_v50 = vld [vmem:[%s5540_s0 + $0x1e0] sm:$0xff] }
 0x188   :  { %v706_v51 = vpop.f32.mrf.mxu0  ;;  %1864 = vperm.xlu1 %3997, %v3344_v50  }
 0x189   :  { %v707_v41 = vadd.f32 %v4585_v46, %v706_v51  ;;  %v811_v19 = vmax.f32 %v715_v42, 0.0  ;;  %v4642_v51 = vld [vmem:[%s5541_s1 + $0x5c] sm:$0xff]   ;;  %v4018_v42 = vld [vmem:[%s5541_s1 + $0x34] ss:$0 sps:$4 sm:$0x11]  }
 0x18a   :  { %v3623_v52 = vpop.f32.mrf.mxu0  ;;  %3688 = vmatprep.subr.bf16.mxu0 %v4642_v51 }
 0x18b   :  { %v718_v29 = vadd.f32 %v3623_v52, %v4585_v46  ;;  %v809_v45 = vmax.f32 %v707_v41, 0.0  ;;  %3689 = vmatpush3.bf16.msra.mxu0 %v4642_v51 }
 0x18c   :  { %v709_v55 = vpop.f32.mrf.mxu0  ;;  %3998 = vset.pattern.permute.xlu1 %v4029_v0 }
 0x18d   :  { %v710_v61 = vadd.f32 %v4585_v46, %v709_v55  ;;  %v812_v53 = vmax.f32 %v718_v29, 0.0  ;;  %v4651_v29 = vld [vmem:[%s5541_s1 + $0x54] sm:$0xff]   ;;  %2027 = vperm.xlu1 %3998, %v3344_v50   ;;  %v3345_v55 = vld [vmem:[%s5540_s0 + $0x1e8] sm:$0xff] }
 0x18e   :  { %3690 = vmatprep.subr.bf16.mxu0 %v4651_v29  ;;  %1869 = vperm.xlu0 %3995, %v3345_v55  }
 0x18f   :  { %v810_v6 = vmax.f32 %v710_v61, 0.0  ;;  %v838_v38 = vpack.c.bf16 %v812_v53, %v811_v19  ;;  %3691 = vmatpush3.bf16.msra.mxu0 %v4651_v29  ;;  %v3346_v53 = vld [vmem:[%s5540_s0 + $0x1f0] sm:$0xff] }
 0x190   :  { %3928 = vmatprep.subr.msk.bf16.mxu0 %vm636_vm0, %v4018_v42 }
 0x191   :  { %v837_v9 = vpack.c.bf16 %v810_v6, %v809_v45  ;;  %2031 = vperm.xlu1 %3998, %v3345_v55   ;;  %v3347_v45 = vld [vmem:[%s5540_s0 + $0x1f8] sm:$0xff] }
 0x192   :  { %1874 = vperm.xlu0 %3995, %v3346_v53  }
 0x193   :  { %3660 = vmatprep.mubr.msk.bf16.mxu1 %vm587_vm1, %v837_v9 }
 0x194   :  { %3661 = vmatmul.mubr.msk.bf16.gmra.mxu1 %vm587_vm1, %v838_v38 }
 0x195   :  { %3999 = vset.pattern.permute.xlu1 %v4030_v7 }
 0x196   :  { %1879 = vperm.xlu1 %3999, %v3347_v45   ;;  %4000 = vset.pattern.permute.xlu0 %v4029_v0 }
 0x197   :  { %2035 = vperm.xlu0 %4000, %v3346_v53  }
 0x19a   :  { %4001 = vset.pattern.permute.xlu1 %v4029_v0 }
 0x19b   :  { %2039 = vperm.xlu1 %4001, %v3347_v45  }
 0x19e   :  { %v3626_v11 = vpop.f32.mrf.mxu0 }
 0x19f   :  { %v731_v18 = vadd.f32 %v3626_v11, %v4585_v46 }
 0x1a0   :  { %v722_v13 = vpop.f32.mrf.mxu0 }
 0x1a1   :  { %v723_v16 = vadd.f32 %v4585_v46, %v722_v13  ;;  %v815_v24 = vmax.f32 %v731_v18, 0.0 }
 0x1a2   :  { %v3627_v14 = vpop.f32.mrf.mxu0 }
 0x1a3   :  { %v734_v17 = vadd.f32 %v3627_v14, %v4585_v46  ;;  %v813_v1 = vmax.f32 %v723_v16, 0.0 }
 0x1a4   :  { %v725_v20 = vpop.f32.mrf.mxu0 }
 0x1a5   :  { %v726_v21 = vadd.f32 %v4585_v46, %v725_v20  ;;  %v816_v23 = vmax.f32 %v734_v17, 0.0 }
 0x1a7   :  { %v814_v3 = vmax.f32 %v726_v21, 0.0  ;;  %v840_v25 = vpack.c.bf16 %v816_v23, %v815_v24 }
 0x1a9   :  { %v839_v49 = vpack.c.bf16 %v814_v3, %v813_v1 }
 0x1ab   :  { %3664 = vmatprep.mubr.msk.bf16.mxu1 %vm587_vm1, %v839_v49 }
 0x1ac   :  { %3665 = vmatmul.mubr.msk.bf16.gmra.mxu1 %vm587_vm1, %v840_v25 }
 0x1b6   :  { %v3630_v26 = vpop.f32.mrf.mxu0 }
 0x1b7   :  { %v747_v34 = vadd.f32 %v3630_v26, %v4585_v46 }
 0x1b8   :  { %v738_v30 = vpop.f32.mrf.mxu0 }
 0x1b9   :  { %v739_v39 = vadd.f32 %v4585_v46, %v738_v30  ;;  %v819_v48 = vmax.f32 %v747_v34, 0.0 }
 0x1ba   :  { %v3631_v31 = vpop.f32.mrf.mxu0 }
 0x1bb   :  { %v750_v32 = vadd.f32 %v3631_v31, %v4585_v46  ;;  %v817_v27 = vmax.f32 %v739_v39, 0.0 }
 0x1bc   :  { %v741_v37 = vpop.f32.mrf.mxu0 }
 0x1bd   :  { %v742_v47 = vadd.f32 %v4585_v46, %v741_v37  ;;  %v820_v58 = vmax.f32 %v750_v32, 0.0 }
 0x1bf   :  { %v818_v43 = vmax.f32 %v742_v47, 0.0  ;;  %v842_v41 = vpack.c.bf16 %v820_v58, %v819_v48 }
 0x1c1   :  { %v841_v52 = vpack.c.bf16 %v818_v43, %v817_v27 }
 0x1c3   :  { %3668 = vmatprep.mubr.msk.bf16.mxu1 %vm587_vm1, %v841_v52 }
 0x1c4   :  { %3669 = vmatmul.mubr.msk.bf16.gmra.mxu1 %vm587_vm1, %v842_v41 }
 0x1ce   :  { %v3634_v61 = vpop.f32.mrf.mxu0 }
 0x1cf   :  { %v763_v7 = vadd.f32 %v3634_v61, %v4585_v46 }
 0x1d0   :  { %v754_v6 = vpop.f32.mrf.mxu0 }
 0x1d1   :  { %v755_v9 = vadd.f32 %v4585_v46, %v754_v6  ;;  %v823_v18 = vmax.f32 %v763_v7, 0.0 }
 0x1d2   :  { %v3635_v19 = vpop.f32.mrf.mxu0 }
 0x1d3   :  { %v766_v38 = vadd.f32 %v3635_v19, %v4585_v46  ;;  %v821_v16 = vmax.f32 %v755_v9, 0.0 }
 0x1d4   :  { %v757_v11 = vpop.f32.mrf.mxu0 }
 0x1d5   :  { %v758_v13 = vadd.f32 %v4585_v46, %v757_v11  ;;  %v824_v14 = vmax.f32 %v766_v38, 0.0  ;;  %v4693_v38 = vld [vmem:[%s5542_s2 + $0x2] ss:$0 sm:$0xff] }
 0x1d7   :  { %v822_v17 = vmax.f32 %v758_v13, 0.0  ;;  %v844_v21 = vpack.c.bf16 %v824_v14, %v823_v18 }
 0x1d9   :  { %v843_v20 = vpack.c.bf16 %v822_v17, %v821_v16 }
 0x1db   :  { %3672 = vmatprep.mubr.msk.bf16.mxu1 %vm587_vm1, %v843_v20 }
 0x1dc   :  { %3673 = vmatmul.mubr.msk.bf16.gmra.mxu1 %vm587_vm1, %v844_v21 }
 0x1e6   :  { %v3638_v23 = vpop.f32.mrf.mxu0 }
 0x1e7   :  { %v779_v49 = vadd.f32 %v3638_v23, %v4585_v46 }
 0x1e8   :  { %v770_v1 = vpop.f32.mrf.mxu0 }
 0x1e9   :  { %v771_v3 = vadd.f32 %v4585_v46, %v770_v1  ;;  %v827_v32 = vmax.f32 %v779_v49, 0.0 }
 0x1ea   :  { %v3639_v0 = vpop.f32.mrf.mxu0 }
 0x1eb   :  { %v782_v24 = vadd.f32 %v3639_v0, %v4585_v46  ;;  %v825_v31 = vmax.f32 %v771_v3, 0.0 }
 0x1ec   :  { %v773_v25 = vpop.f32.mrf.mxu0 }
 0x1ed   :  { %v774_v26 = vadd.f32 %v4585_v46, %v773_v25  ;;  %v828_v30 = vmax.f32 %v782_v24, 0.0 }
 0x1ef   :  { %v826_v39 = vmax.f32 %v774_v26, 0.0  ;;  %v846_v37 = vpack.c.bf16 %v828_v30, %v827_v32  ;;  %v4019_v32 = vld [vmem:[%s5541_s1 + $0x2c] sm:$0xff]  }
 0x1f1   :  { %v845_v34 = vpack.c.bf16 %v826_v39, %v825_v31 }
 0x1f3   :  { %3676 = vmatprep.mubr.msk.bf16.mxu1 %vm587_vm1, %v845_v34 }
 0x1f4   :  { %3677 = vmatmul.mubr.msk.bf16.gmra.mxu1 %vm587_vm1, %v846_v37 }
 0x1fe   :  { %v3642_v47 = vpop.f32.mrf.mxu0 }
 0x1ff   :  { %v795_v50 = vadd.f32 %v3642_v47, %v4585_v46 }
 0x200   :  { %v786_v58 = vpop.f32.mrf.mxu0 }
 0x201   :  { %v787_v43 = vadd.f32 %v4585_v46, %v786_v58  ;;  %v831_v53 = vmax.f32 %v795_v50, 0.0 }
 0x202   :  { %v3643_v27 = vpop.f32.mrf.mxu0 }
 0x203   :  { %v798_v48 = vadd.f32 %v3643_v27, %v4585_v46  ;;  %v829_v55 = vmax.f32 %v787_v43, 0.0  ;;  %v4020_v43 = vld [vmem:[%s5541_s1 + $0x24] sm:$0xff]  }
 0x204   :  { %v789_v52 = vpop.f32.mrf.mxu0 }
 0x205   :  { %v790_v41 = vadd.f32 %v4585_v46, %v789_v52  ;;  %v832_v42 = vmax.f32 %v798_v48, 0.0 }
 0x207   :  { %v830_v61 = vmax.f32 %v790_v41, 0.0  ;;  %v848_v6 = vpack.c.bf16 %v832_v42, %v831_v53 }
 0x209   :  { %v847_v45 = vpack.c.bf16 %v830_v61, %v829_v55 }
 0x20b   :  { %3680 = vmatprep.mubr.msk.bf16.mxu1 %vm587_vm1, %v847_v45 }
 0x20c   :  { %3681 = vmatmul.mubr.msk.bf16.gmra.mxu1 %vm587_vm1, %v848_v6 }
 0x23b   :  { %v3654_v19 = vpop.f32.mrf.mxu1 }
 0x23c   :  { %v968_v13 = vadd.f32 %v3654_v19, %v4693_v38 }
 0x23d   :  { %v959_v9 = vpop.f32.mrf.mxu1 }
 0x23e   :  { %v960_v46 = vadd.f32 %v4693_v38, %v959_v9  ;;  %v1088_v23 = vmax.f32 %v968_v13, 0.0 }
 0x23f   :  { %v3655_v7 = vpop.f32.mrf.mxu1 }
 0x240   :  { %v971_v11 = vadd.f32 %v3655_v7, %v4693_v38  ;;  %v1086_v20 = vmax.f32 %v960_v46, 0.0 }
 0x241   :  { %v962_v14 = vpop.f32.mrf.mxu1 }
 0x242   :  { %v963_v16 = vadd.f32 %v4693_v38, %v962_v14  ;;  %v1089_v17 = vmax.f32 %v971_v11, 0.0  ;;  %v4725_v11 = vpop.permute.xlu1 %1951 }
 0x243   :  { %v3658_v18 = vpop.f32.mrf.mxu1 }
 0x244   :  { %v1087_v21 = vmax.f32 %v963_v16, 0.0  ;;  %v1119_v3 = vpack.c.bf16 %v1089_v17, %v1088_v23  ;;  %v984_v26 = vadd.f32 %v3658_v18, %v4693_v38 }
 0x245   :  { %v975_v1 = vpop.f32.mrf.mxu1 }
 0x246   :  { %v1118_v0 = vpack.c.bf16 %v1087_v21, %v1086_v20  ;;  %v976_v49 = vadd.f32 %v4693_v38, %v975_v1  ;;  %v1092_v47 = vmax.f32 %v984_v26, 0.0  ;;  %v4730_v21 = vpop.permute.xlu1 %1779 }
 0x247   :  { %v3659_v24 = vpop.f32.mrf.mxu1 }
 0x248   :  { %v987_v25 = vadd.f32 %v3659_v24, %v4693_v38  ;;  %3692 = vmatprep.mubr.msk.bf16.mxu0 %vm587_vm1, %v1118_v0  ;;  %v1090_v34 = vmax.f32 %v976_v49, 0.0 }
 0x249   :  { %v978_v30 = vpop.f32.mrf.mxu1  ;;  %3693 = vmatmul.mubr.msk.bf16.vlgmr.msra.gmra.mxu0 %vm587_vm1, %v1119_v3 }
 0x24a   :  { %v979_v31 = vadd.f32 %v4693_v38, %v978_v30  ;;  %3765 = vmatpush3.bf16.msra.mxu0 %v4101_v15  ;;  %v1093_v39 = vmax.f32 %v987_v25, 0.0  ;;  %v4021_v15 = vld [vmem:[%s5541_s1 + $0x1c] sm:$0xff]   ;;  %v4733_v26 = vpop.permute.xlu1 %1959 }
 0x24b   :  { %3766 = vmatprep.subr.bf16.mxu0 %v4019_v32 }
 0x24c   :  { %v1091_v37 = vmax.f32 %v979_v31, 0.0  ;;  %v1121_v27 = vpack.c.bf16 %v1093_v39, %v1092_v47  ;;  %v4744_v39 = vld [vmem:[%s5541_s1 + $0x88] ss:$0 sps:$4 sm:$0x11]  }
 0x24d   :  { %3927 = vmatprep.subr.msk.bf16.mxu1 %vm636_vm0, %v4744_v39 }
 0x24e   :  { %v1120_v58 = vpack.c.bf16 %v1091_v37, %v1090_v34  ;;  %3767 = vmatpush3.bf16.msra.mxu0 %v4019_v32  ;;  %v4737_v30 = vpop.permute.xlu1 %1784  ;;  %v4750_v34 = vsel %vm636_vm0, %v4744_v39, 0 }
 0x24f   :  { %3768 = vmatprep.subr.bf16.mxu0 %v4020_v43  ;;  %3725 = vmatpush3.bf16.msra.mxu1 %v4750_v34 }
 0x250   :  { %3696 = vmatprep.mubr.msk.bf16.mxu0 %vm587_vm1, %v1120_v58 }
 0x251   :  { %3697 = vmatmul.mubr.msk.bf16.gmra.mxu0 %vm587_vm1, %v1121_v27 }
 0x252   :  { %3769 = vmatpush3.bf16.msra.mxu0 %v4020_v43  ;;  %v4739_v31 = vpop.permute.xlu1 %1963 }
 0x253   :  { %3770 = vmatprep.subr.bf16.mxu0 %v4021_v15 }
 0x254   :  { %v3662_v48 = vpop.f32.mrf.mxu1 }
 0x255   :  { %v1000_v55 = vadd.f32 %v3662_v48, %v4693_v38 }
 0x256   :  { %v991_v50 = vpop.f32.mrf.mxu1  ;;  %3771 = vmatpush3.bf16.msra.mxu0 %v4021_v15  ;;  %v4753_v58 = vpop.permute.xlu1 %1967 }
 0x257   :  { %3930 = vmatprep.subr.msk.bf16.mxu0 %vm636_vm0, %v4607_v56  ;;  %v992_v41 = vadd.f32 %v4693_v38, %v991_v50  ;;  %v1096_v9 = vmax.f32 %v1000_v55, 0.0  ;;  %v4761_v50 = vld [vmem:[%s5541_s1 + $0x80] sm:$0xff]  }
 0x258   :  { %v3663_v52 = vpop.f32.mrf.mxu1  ;;  %3726 = vmatprep.subr.bf16.mxu1 %v4761_v50 }
 0x259   :  { %v1003_v42 = vadd.f32 %v3663_v52, %v4693_v38  ;;  %v1094_v6 = vmax.f32 %v992_v41, 0.0  ;;  %3727 = vmatpush3.bf16.msra.mxu1 %v4761_v50 }
 0x25a   :  { %v994_v61 = vpop.f32.mrf.mxu1 }
 0x25b   :  { %v995_v53 = vadd.f32 %v4693_v38, %v994_v61  ;;  %v1097_v45 = vmax.f32 %v1003_v42, 0.0 }
 0x25d   :  { %v1095_v19 = vmax.f32 %v995_v53, 0.0  ;;  %v1123_v46 = vpack.c.bf16 %v1097_v45, %v1096_v9  ;;  %v4769_v53 = vld [vmem:[%s5541_s1 + $0x78] sm:$0xff]   ;;  %v4771_v45 = vpop.permute.xlu1 %1799  ;;  %v4780_v9 = vld [vmem:[%s5541_s1 + $0x70] sm:$0xff]  }
 0x25e   :  { %5548 = vst [vmem:[#allocation2_spill] sm:$0xff] %v4769_v53  ;;  %3728 = vmatprep.subr.bf16.mxu1 %v4769_v53  ;;  %5549 = vst [vmem:[#allocation3_spill] sm:$0xff] %v4780_v9 }
 0x25f   :  { %v1122_v7 = vpack.c.bf16 %v1095_v19, %v1094_v6  ;;  %3729 = vmatpush3.bf16.msra.mxu1 %v4769_v53  ;;  %v4834_v53 = vld [vmem:[%s5542_s2] ss:$0 sm:$0xff] }
 0x260   :  { %3730 = vmatprep.subr.bf16.mxu1 %v4780_v9 }
 0x261   :  { %3700 = vmatprep.mubr.msk.bf16.mxu0 %vm587_vm1, %v1122_v7  ;;  %v4783_v7 = vpop.permute.xlu1 %1975 }
 0x262   :  { %3701 = vmatmul.mubr.msk.bf16.gmra.mxu0 %vm587_vm1, %v1123_v46 }
 0x263   :  { %3731 = vmatpush3.bf16.msra.mxu1 %v4780_v9 }
 0x264   :  { %3929 = vmatprep.subr.msk.bf16.mxu1 %vm636_vm0, %v4413_v54 }
 0x265   :  { %v4788_v46 = vpop.permute.xlu1 %1804 }
 0x26c   :  { %v3666_v56 = vpop.f32.mrf.mxu1 }
 0x26d   :  { %v1016_v18 = vadd.f32 %v3666_v56, %v4693_v38 }
 0x26e   :  { %v1007_v13 = vpop.f32.mrf.mxu1 }
 0x26f   :  { %v1008_v16 = vadd.f32 %v4693_v38, %v1007_v13  ;;  %v1100_v24 = vmax.f32 %v1016_v18, 0.0 }
 0x270   :  { %v3667_v14 = vpop.f32.mrf.mxu1 }
 0x271   :  { %v1019_v17 = vadd.f32 %v3667_v14, %v4693_v38  ;;  %v1098_v0 = vmax.f32 %v1008_v16, 0.0  ;;  %v4790_v14 = vpop.permute.xlu1 %1979 }
 0x272   :  { %v1010_v20 = vpop.f32.mrf.mxu1 }
 0x273   :  { %v1011_v23 = vadd.f32 %v4693_v38, %v1010_v20  ;;  %v1101_v1 = vmax.f32 %v1019_v17, 0.0 }
 0x275   :  { %v1099_v3 = vmax.f32 %v1011_v23, 0.0  ;;  %v1125_v25 = vpack.c.bf16 %v1101_v1, %v1100_v24 }
 0x277   :  { %v1124_v49 = vpack.c.bf16 %v1099_v3, %v1098_v0  ;;  %v4796_v3 = vpop.permute.xlu1 %1983 }
 0x279   :  { %3704 = vmatprep.mubr.msk.bf16.mxu0 %vm587_vm1, %v1124_v49 }
 0x27a   :  { %3705 = vmatmul.mubr.msk.bf16.gmra.mxu0 %vm587_vm1, %v1125_v25 }
 0x284   :  { %v3670_v32 = vpop.f32.mrf.mxu1 }
 0x285   :  { %v1032_v15 = vadd.f32 %v3670_v32, %v4693_v38 }
 0x286   :  { %v1023_v37 = vpop.f32.mrf.mxu1 }
 0x287   :  { %v1024_v27 = vadd.f32 %v4693_v38, %v1023_v37  ;;  %v1104_v61 = vmax.f32 %v1032_v15, 0.0  ;;  %v4800_v37 = vpop.permute.xlu1 %1819 }
 0x288   :  { %v3671_v47 = vpop.f32.mrf.mxu1 }
 0x289   :  { %v1035_v43 = vadd.f32 %v3671_v47, %v4693_v38  ;;  %v1102_v42 = vmax.f32 %v1024_v27, 0.0 }
 0x28a   :  { %v1026_v48 = vpop.f32.mrf.mxu1 }
 0x28b   :  { %v1027_v52 = vadd.f32 %v4693_v38, %v1026_v48  ;;  %v1105_v41 = vmax.f32 %v1035_v43, 0.0  ;;  %v4802_v47 = vpop.permute.xlu1 %1991 }
 0x28d   :  { %v1103_v55 = vmax.f32 %v1027_v52, 0.0  ;;  %v1127_v19 = vpack.c.bf16 %v1105_v41, %v1104_v61  ;;  %v1755_v52 = vpop.permute.xlu0 %1754 }
 0x28f   :  { %v1126_v6 = vpack.c.bf16 %v1103_v55, %v1102_v42  ;;  %v4804_v43 = vpop.permute.xlu1 %1824 }
 0x291   :  { %3708 = vmatprep.mubr.msk.bf16.mxu0 %vm587_vm1, %v1126_v6 }
 0x292   :  { %3709 = vmatmul.mubr.msk.bf16.gmra.mxu0 %vm587_vm1, %v1127_v19 }
 0x293   :  { %v4809_v6 = vpop.permute.xlu1 %1995 }
 0x29c   :  { %v3674_v56 = vpop.f32.mrf.mxu1 }
 0x29d   :  { %v1048_v20 = vadd.f32 %v3674_v56, %v4693_v38 }
 0x29e   :  { %v1039_v13 = vpop.f32.mrf.mxu1 }
 0x29f   :  { %v1040_v17 = vadd.f32 %v4693_v38, %v1039_v13  ;;  %v1108_v49 = vmax.f32 %v1048_v20, 0.0 }
 0x2a0   :  { %v3675_v16 = vpop.f32.mrf.mxu1 }
 0x2a1   :  { %v1051_v18 = vadd.f32 %v3675_v16, %v4693_v38  ;;  %v1106_v54 = vmax.f32 %v1040_v17, 0.0 }
 0x2a2   :  { %v1042_v23 = vpop.f32.mrf.mxu1 }
 0x2a3   :  { %v1043_v1 = vadd.f32 %v4693_v38, %v1042_v23  ;;  %v1109_v0 = vmax.f32 %v1051_v18, 0.0  ;;  %v1770_v18 = vpop.permute.xlu0 %1769 }
 0x2a4   :  { %v1891_v9 = vmul.f32 %v1770_v18, %v4268_v4  ;;  %v2048_v18 = vmul.f32 %v4489_v22, %v4263_v2  ;;  %v2114_v22 = vadd.f32 %v4834_v53, %v4587_v12  ;;  %v2052_v12 = vmul.f32 %v4497_v59, %v4263_v2 }
 0x2a5   :  { %v1107_v24 = vmax.f32 %v1043_v1, 0.0  ;;  %v1129_v32 = vpack.c.bf16 %v1109_v0, %v1108_v49  ;;  %v4812_v1 = vpop.permute.xlu1 %1999 }
 0x2a7   :  { %v1128_v25 = vpack.c.bf16 %v1107_v24, %v1106_v54  ;;  %v1775_v0 = vpop.permute.xlu0 %1774 }
 0x2a9   :  { %3712 = vmatprep.mubr.msk.bf16.mxu0 %vm587_vm1, %v1128_v25  ;;  %v4816_v54 = vpop.permute.xlu1 %1839 }
 0x2aa   :  { %3713 = vmatmul.mubr.msk.bf16.gmra.mxu0 %vm587_vm1, %v1129_v32 }
 0x2ab   :  { %v1790_v24 = vpop.permute.xlu0 %1789 }
 0x2ad   :  { %v4818_v25 = vpop.permute.xlu1 %2007 }
 0x2b4   :  { %v3678_v27 = vpop.f32.mrf.mxu1 }
 0x2b5   :  { %v1064_v55 = vadd.f32 %v3678_v27, %v4693_v38 }
 0x2b6   :  { %v1055_v15 = vpop.f32.mrf.mxu1 }
 0x2b7   :  { %v1056_v41 = vadd.f32 %v4693_v38, %v1055_v15  ;;  %v1112_v17 = vmax.f32 %v1064_v55, 0.0  ;;  %v2044_v15 = vmul.f32 %v4479_v8, %v4263_v2 }
 0x2b8   :  { %v3679_v48 = vpop.f32.mrf.mxu1 }
 0x2b9   :  { %v1067_v42 = vadd.f32 %v3679_v48, %v4693_v38  ;;  %v1110_v13 = vmax.f32 %v1056_v41, 0.0  ;;  %v1884_v48 = vmul.f32 %v4558_v36, %v4268_v4  ;;  %v1795_v41 = vpop.permute.xlu0 %1794 }
 0x2ba   :  { %v1058_v61 = vpop.f32.mrf.mxu1 }
 0x2bb   :  { %v1059_v19 = vadd.f32 %v4693_v38, %v1058_v61  ;;  %v1113_v56 = vmax.f32 %v1067_v42, 0.0  ;;  %v4824_v42 = vpop.permute.xlu1 %1844 }
 0x2bd   :  { %v1111_v16 = vmax.f32 %v1059_v19, 0.0  ;;  %v1131_v23 = vpack.c.bf16 %v1113_v56, %v1112_v17  ;;  %v2076_v17 = vadd.f32 %v2044_v15, %v1884_v48  ;;  %v1810_v36 = vpop.permute.xlu0 %1809 }
 0x2bf   :  { %v1130_v20 = vpack.c.bf16 %v1111_v16, %v1110_v13  ;;  %v2108_v48 = vadd.f32 %v4834_v53, %v2076_v17  ;;  %v2113_v17 = vadd.f32 %v4834_v53, %v4578_v63  ;;  %v2055_v63 = vmul.f32 %v4753_v58, %v4263_v2 }
 0x2c1   :  { %3716 = vmatprep.mubr.msk.bf16.mxu0 %vm587_vm1, %v1130_v20 }
 0x2c2   :  { %3717 = vmatmul.mubr.msk.bf16.gmra.mxu0 %vm587_vm1, %v1131_v23 }
 0x2cc   :  { %v3682_v49 = vpop.f32.mrf.mxu1 }
 0x2cd   :  { %v1080_v19 = vadd.f32 %v3682_v49, %v4693_v38  ;;  %v2051_v49 = vmul.f32 %v4725_v11, %v4263_v2  ;;  %v2140_v11 = vmax.f32 %v2108_v48, 0.0  ;;  %v1897_v48 = vmul.f32 %v4771_v45, %v4268_v4 }
 0x2ce   :  { %v1071_v32 = vpop.f32.mrf.mxu1 }
 0x2cf   :  { %v1072_v55 = vadd.f32 %v4693_v38, %v1071_v32  ;;  %v1116_v8 = vmax.f32 %v1080_v19, 0.0  ;;  %v2109_v32 = vadd.f32 %v4834_v53, %v4556_v33  ;;  %v2083_v33 = vadd.f32 %v2051_v49, %v1891_v9  ;;  %v4850_v19 = vpop.permute.xlu0 %1814 }
 0x2d0   :  { %v3683_v27 = vpop.f32.mrf.mxu1  ;;  %v1893_v9 = vmul.f32 %v4730_v21, %v4268_v4  ;;  %v1892_v21 = vmul.f32 %v1775_v0, %v4268_v4  ;;  %v2145_v49 = vmax.f32 %v2113_v17, 0.0 }
 0x2d1   :  { %v1083_v61 = vadd.f32 %v3683_v27, %v4693_v38  ;;  %v1114_v20 = vmax.f32 %v1072_v55, 0.0  ;;  %v1888_v55 = vmul.f32 %v1755_v52, %v4268_v4  ;;  %v2115_v52 = vadd.f32 %v4834_v53, %v2083_v33 }
 0x2d2   :  { %v1074_v56 = vpop.f32.mrf.mxu1  ;;  %v2084_v0 = vadd.f32 %v2052_v12, %v1892_v21  ;;  %v1902_v12 = vmul.f32 %v4804_v43, %v4268_v4  ;;  %v2060_v43 = vmul.f32 %v4514_v44, %v4263_v2 }
 0x2d3   :  { %v1075_v13 = vadd.f32 %v4693_v38, %v1074_v56  ;;  %v1117_v16 = vmax.f32 %v1083_v61, 0.0  ;;  %v4840_v38 = vpop.permute.xlu1 %2011  ;;  %v2141_v61 = vmax.f32 %v2109_v32, 0.0  ;;  %v2147_v58 = vmax.f32 %v2115_v52, 0.0 }
 0x2d5   :  { %v1115_v23 = vmax.f32 %v1075_v13, 0.0  ;;  %v1133_v15 = vpack.c.bf16 %v1117_v16, %v1116_v8  ;;  %v2080_v13 = vadd.f32 %v2048_v18, %v1888_v55  ;;  %v2171_v16 = vpack.c.bf16 %v2141_v61, %v2140_v11 }
 0x2d6   :  { %v1895_v8 = vmul.f32 %v1790_v24, %v4268_v4  ;;  %v2057_v18 = vmul.f32 %v4783_v7, %v4263_v2  ;;  %v1899_v55 = vmul.f32 %v1810_v36, %v4268_v4 }
 0x2d7   :  { %v1132_v27 = vpack.c.bf16 %v1115_v23, %v1114_v20  ;;  %v4852_v56 = vpop.permute.xlu1 %2015  ;;  %v1894_v20 = vmul.f32 %v4737_v30, %v4268_v4  ;;  %v2054_v23 = vmul.f32 %v4739_v31, %v4263_v2  ;;  %v2112_v32 = vadd.f32 %v4834_v53, %v2080_v13 }
 0x2d8   :  { %v2146_v31 = vmax.f32 %v2114_v22, 0.0  ;;  %v2087_v59 = vadd.f32 %v2055_v63, %v1895_v8  ;;  %v2089_v17 = vadd.f32 %v2057_v18, %v1897_v48  ;;  %v1901_v63 = vmul.f32 %v4800_v37, %v4268_v4 }
 0x2d9   :  { %3720 = vmatprep.mubr.msk.bf16.mxu0 %vm587_vm1, %v1132_v27  ;;  %v2086_v27 = vadd.f32 %v2054_v23, %v1894_v20 }
 0x2da   :  { %3721 = vmatmul.mubr.msk.bf16.gmra.mxu0 %vm587_vm1, %v1133_v15  ;;  %v2144_v15 = vmax.f32 %v2112_v32, 0.0  ;;  %v2174_v33 = vpack.c.bf16 %v2147_v58, %v2146_v31  ;;  %v2119_v7 = vadd.f32 %v4834_v53, %v2087_v59  ;;  %v2121_v23 = vadd.f32 %v4834_v53, %v2089_v17 }
 0x2db   :  { %3772 = vmatprep.mubr.msk.bf16.mxu0 %vm587_vm1, %v4548_v28  ;;  %v2053_v28 = vmul.f32 %v4733_v26, %v4263_v2  ;;  %v1830_v26 = vpop.permute.xlu0 %1829  ;;  %v4875_v30 = vpop.permute.xlu1 %1859  ;;  %v2118_v13 = vadd.f32 %v4834_v53, %v2086_v27  ;;  %v2062_v32 = vmul.f32 %v4809_v6, %v4263_v2  ;;  %v2063_v58 = vmul.f32 %v4812_v1, %v4263_v2 }
 0x2dc   :  { %v2173_v61 = vpack.c.bf16 %v2145_v49, %v2144_v15  ;;  %v1903_v49 = vmul.f32 %v1830_v26, %v4268_v4  ;;  %v1900_v6 = vmul.f32 %v4850_v19, %v4268_v4 }
 0x2dd   :  { %v2085_v24 = vadd.f32 %v2053_v28, %v1893_v9  ;;  %v2094_v26 = vadd.f32 %v2062_v32, %v1902_v12 }
 0x2de   :  { %v2095_v15 = vadd.f32 %v2063_v58, %v1903_v49  ;;  %v2092_v44 = vadd.f32 %v2060_v43, %v1900_v6 }
 0x2df   :  { %v2117_v11 = vadd.f32 %v4834_v53, %v2085_v24  ;;  %v1835_v45 = vpop.permute.xlu0 %1834  ;;  %v4900_v36 = vpop.permute.xlu1 %2023 }
 0x2e0   :  { %v2124_v17 = vadd.f32 %v4834_v53, %v2092_v44 }
 0x2e1   :  { %v2149_v52 = vmax.f32 %v2117_v11, 0.0  ;;  %v1905_v11 = vmul.f32 %v4816_v54, %v4268_v4 }
 0x2e2   :  { %3773 = vmatmul.mubr.msk.bf16.vlgmr.msra.gmra.mxu0 %vm587_vm1, %v2171_v16  ;;  %v2116_v16 = vadd.f32 %v4834_v53, %v2084_v0  ;;  %v2064_v0 = vmul.f32 %v4524_v60, %v4263_v2  ;;  %v2127_v60 = vadd.f32 %v4834_v53, %v2095_v15 }
 0x2e3   :  { %3776 = vmatprep.mubr.msk.bf16.mxu0 %vm587_vm1, %v4573_v57  ;;  %3845 = vmatpush3.bf16.msra.mxu0 %v4614_v62  ;;  %v2056_v57 = vmul.f32 %v4504_v35, %v4263_v2  ;;  %v1896_v62 = vmul.f32 %v1795_v41, %v4268_v4  ;;  %v1898_v35 = vmul.f32 %v4788_v46, %v4268_v4  ;;  %v2150_v46 = vmax.f32 %v2118_v13, 0.0  ;;  %v1850_v8 = vpop.permute.xlu0 %1849 }
 0x2e4   :  { %3846 = vmatprep.subr.bf16.mxu0 %v4631_v40  ;;  %v2058_v41 = vmul.f32 %v4790_v14, %v4263_v2  ;;  %v2151_v14 = vmax.f32 %v2119_v7, 0.0  ;;  %v2148_v20 = vmax.f32 %v2116_v16, 0.0  ;;  %v1907_v19 = vmul.f32 %v1850_v8, %v4268_v4 }
 0x2e5   :  { %v2088_v22 = vadd.f32 %v2056_v57, %v1896_v62  ;;  %v1904_v62 = vmul.f32 %v1835_v45, %v4268_v4  ;;  %v2065_v13 = vmul.f32 %v4818_v25, %v4263_v2  ;;  %v1906_v7 = vmul.f32 %v4824_v42, %v4268_v4 }
 0x2e6   :  { %v2090_v9 = vadd.f32 %v2058_v41, %v1898_v35  ;;  %v2175_v31 = vpack.c.bf16 %v2149_v52, %v2148_v20  ;;  %v2176_v37 = vpack.c.bf16 %v2151_v14, %v2150_v46  ;;  %v2066_v45 = vmul.f32 %v4840_v38, %v4263_v2 }
 0x2e7   :  { %3847 = vmatpush3.bf16.msra.mxu0 %v4631_v40  ;;  %v2059_v40 = vmul.f32 %v4796_v3, %v4263_v2  ;;  %v4907_v3 = vpop.permute.xlu1 %1864  ;;  %v2120_v21 = vadd.f32 %v4834_v53, %v2088_v22  ;;  %v1855_v48 = vpop.permute.xlu0 %1854  ;;  %v2067_v35 = vmul.f32 %v4852_v56, %v4263_v2  ;;  %v2096_v54 = vadd.f32 %v2064_v0, %v1904_v62 }
 0x2e8   :  { %3848 = vmatprep.subr.bf16.mxu0 %v4642_v51  ;;  %v2122_v24 = vadd.f32 %v4834_v53, %v2090_v9  ;;  %v2097_v22 = vadd.f32 %v2065_v13, %v1905_v11  ;;  %v2159_v42 = vmax.f32 %v2127_v60, 0.0  ;;  %v2098_v46 = vadd.f32 %v2066_v45, %v1906_v7 }
 0x2e9   :  { %v2091_v28 = vadd.f32 %v2059_v40, %v1899_v55  ;;  %v2152_v1 = vmax.f32 %v2120_v21, 0.0  ;;  %v2099_v14 = vadd.f32 %v2067_v35, %v1907_v19  ;;  %v2156_v38 = vmax.f32 %v2124_v17, 0.0 }
 0x2ea   :  { %3777 = vmatmul.mubr.msk.bf16.gmra.mxu0 %vm587_vm1, %v2173_v61  ;;  %v2154_v18 = vmax.f32 %v2122_v24, 0.0  ;;  %v2128_v9 = vadd.f32 %v4834_v53, %v2096_v54  ;;  %v2129_v56 = vadd.f32 %v4834_v53, %v2097_v22  ;;  %v2069_v20 = vmul.f32 %v4900_v36, %v4263_v2 }
 0x2eb   :  { %3780 = vmatprep.mubr.msk.bf16.mxu0 %vm587_vm1, %v2174_v33  ;;  %3849 = vmatpush3.bf16.msra.mxu0 %v4642_v51  ;;  %v2061_v51 = vmul.f32 %v4802_v47, %v4263_v2  ;;  %v2123_v47 = vadd.f32 %v4834_v53, %v2091_v28  ;;  %v2028_v59 = vpop.permute.xlu1 %2027  ;;  %v2126_v33 = vadd.f32 %v4834_v53, %v2094_v26  ;;  %v1870_v40 = vpop.permute.xlu0 %1869 }
 0x2ec   :  { %3850 = vmatprep.subr.bf16.mxu0 %v4651_v29  ;;  %v1909_v28 = vmul.f32 %v4875_v30, %v4268_v4  ;;  %v2130_v12 = vadd.f32 %v4834_v53, %v2098_v46  ;;  %v2131_v32 = vadd.f32 %v4834_v53, %v2099_v14  ;;  %v1910_v21 = vmul.f32 %v4907_v3, %v4268_v4 }
 0x2ed   :  { %v2093_v27 = vadd.f32 %v2061_v51, %v1901_v63  ;;  %v2155_v57 = vmax.f32 %v2123_v47, 0.0  ;;  %v2158_v52 = vmax.f32 %v2126_v33, 0.0  ;;  %v2070_v49 = vmul.f32 %v2028_v59, %v4263_v2 }
 0x2ee   :  { %v2068_v36 = vmul.f32 %v4532_v10, %v4263_v2  ;;  %v1908_v58 = vmul.f32 %v1855_v48, %v4268_v4  ;;  %v2101_v24 = vadd.f32 %v2069_v20, %v1909_v28  ;;  %v2160_v47 = vmax.f32 %v2128_v9, 0.0 }
 0x2ef   :  { %3851 = vmatpush3.bf16.msra.mxu0 %v4651_v29  ;;  %v2153_v29 = vmax.f32 %v2121_v23, 0.0  ;;  %v2125_v61 = vadd.f32 %v4834_v53, %v2093_v27  ;;  %v2178_v41 = vpack.c.bf16 %v2155_v57, %v2154_v18  ;;  %v2032_v16 = vpop.permute.xlu1 %2031  ;;  %v1875_v23 = vpop.permute.xlu0 %1874  ;;  %v2180_v51 = vpack.c.bf16 %v2159_v42, %v2158_v52 }
 0x2f0   :  { %v2071_v30 = vmul.f32 %v2032_v16, %v4263_v2  ;;  %v2162_v43 = vmax.f32 %v2130_v12, 0.0  ;;  %v2163_v3 = vmax.f32 %v2131_v32, 0.0  ;;  %v2102_v6 = vadd.f32 %v2070_v49, %v1910_v21 }
 0x2f1   :  { %v2177_v55 = vpack.c.bf16 %v2153_v29, %v2152_v1  ;;  %v2157_v25 = vmax.f32 %v2125_v61, 0.0  ;;  %v2100_v59 = vadd.f32 %v2068_v36, %v1908_v58  ;;  %v2133_v15 = vadd.f32 %v4834_v53, %v2101_v24 }
 0x2f2   :  { %3781 = vmatmul.mubr.msk.bf16.gmra.mxu0 %vm587_vm1, %v2175_v31  ;;  %v1911_v31 = vmul.f32 %v1870_v40, %v4268_v4  ;;  %v1912_v10 = vmul.f32 %v1875_v23, %v4268_v4  ;;  %v2182_v57 = vpack.c.bf16 %v2163_v3, %v2162_v43  ;;  %v2134_v44 = vadd.f32 %v4834_v53, %v2102_v6  ;;  %v4024_v43 = vld [vmem:[%s5541_s1 + $0x40] sm:$0xff]  }
 0x2f3   :  { %3784 = vmatprep.mubr.msk.bf16.mxu0 %vm587_vm1, %v2176_v37  ;;  %v1880_v8 = vpop.permute.xlu1 %1879  ;;  %v2179_v63 = vpack.c.bf16 %v2157_v25, %v2156_v38  ;;  %v2161_v37 = vmax.f32 %v2129_v56, 0.0  ;;  %v2036_v27 = vpop.permute.xlu0 %2035  ;;  %v2165_v33 = vmax.f32 %v2133_v15, 0.0 }
 0x2f4   :  { %v2103_v29 = vadd.f32 %v2071_v30, %v1911_v31  ;;  %v1913_v0 = vmul.f32 %v1880_v8, %v4268_v4  ;;  %v2072_v48 = vmul.f32 %v2036_v27, %v4263_v2  ;;  %v2166_v13 = vmax.f32 %v2134_v44, 0.0  ;;  %v4023_v30 = vld [vmem:[%s5541_s1 + $0x48] sm:$0xff]  }
 0x2f5   :  { %v2181_v1 = vpack.c.bf16 %v2161_v37, %v2160_v47 }
 0x2f6   :  { %v2135_v62 = vadd.f32 %v4834_v53, %v2103_v29  ;;  %v2104_v11 = vadd.f32 %v2072_v48, %v1912_v10 }
 0x2f7   :  { %v2040_v26 = vpop.permute.xlu1 %2039 }
 0x2f8   :  { %v2073_v18 = vmul.f32 %v2040_v26, %v4263_v2  ;;  %v4982_v2 = vld [vmem:[%s5542_s2 + $0x3] ss:$0 sm:$0xff]  ;;  %v2167_v60 = vmax.f32 %v2135_v62, 0.0  ;;  %v2136_v54 = vadd.f32 %v4834_v53, %v2104_v11 }
 0x2fa   :  { %3785 = vmatmul.mubr.msk.bf16.gmra.mxu0 %vm587_vm1, %v2177_v55  ;;  %v2132_v55 = vadd.f32 %v4834_v53, %v2100_v59  ;;  %v2105_v4 = vadd.f32 %v2073_v18, %v1913_v0  ;;  %v2184_v52 = vpack.c.bf16 %v2167_v60, %v2166_v13  ;;  %v2168_v28 = vmax.f32 %v2136_v54, 0.0 }
 0x2fb   :  { %3788 = vmatprep.mubr.msk.bf16.mxu0 %vm587_vm1, %v2178_v41 }
 0x2fc   :  { %v2164_v45 = vmax.f32 %v2132_v55, 0.0  ;;  %v2137_v25 = vadd.f32 %v4834_v53, %v2105_v4 }
 0x2fe   :  { %v2183_v17 = vpack.c.bf16 %v2165_v33, %v2164_v45  ;;  %v2169_v20 = vmax.f32 %v2137_v25, 0.0 }
 0x300   :  { %v2185_v21 = vpack.c.bf16 %v2169_v20, %v2168_v28 }
 0x302   :  { %3789 = vmatmul.mubr.msk.bf16.gmra.mxu0 %vm587_vm1, %v2179_v63 }
 0x303   :  { %3792 = vmatprep.mubr.msk.bf16.mxu0 %vm587_vm1, %v2180_v51 }
 0x309   :  { %v3694_v19 = vpop.f32.mrf.mxu0 }
 0x30a   :  { %3793 = vmatmul.mubr.msk.bf16.gmra.mxu0 %vm587_vm1, %v2181_v1  ;;  %v1253_v40 = vadd.f32 %v3694_v19, %v4982_v2 }
 0x30b   :  { %v1244_v61 = vpop.f32.mrf.mxu0  ;;  %3796 = vmatprep.mubr.msk.bf16.mxu0 %vm587_vm1, %v2182_v57 }
 0x30c   :  { %v1245_v35 = vadd.f32 %v4982_v2, %v1244_v61  ;;  %v1373_v9 = vmax.f32 %v1253_v40, 0.0 }
 0x30d   :  { %v3695_v7 = vpop.f32.mrf.mxu0 }
 0x30e   :  { %v1256_v41 = vadd.f32 %v3695_v7, %v4982_v2  ;;  %v1371_v14 = vmax.f32 %v1245_v35, 0.0 }
 0x30f   :  { %v1247_v16 = vpop.f32.mrf.mxu0 }
 0x310   :  { %v1248_v22 = vadd.f32 %v4982_v2, %v1247_v16  ;;  %v1374_v42 = vmax.f32 %v1256_v41, 0.0 }
 0x311   :  { %v3698_v46 = vpop.f32.mrf.mxu0 }
 0x312   :  { %v1372_v38 = vmax.f32 %v1248_v22, 0.0  ;;  %3797 = vmatmul.mubr.msk.bf16.gmra.mxu0 %vm587_vm1, %v2183_v17  ;;  %v1404_v8 = vpack.c.bf16 %v1374_v42, %v1373_v9  ;;  %v1269_v12 = vadd.f32 %v3698_v46, %v4982_v2 }
 0x313   :  { %v1260_v56 = vpop.f32.mrf.mxu0  ;;  %3800 = vmatprep.mubr.msk.bf16.mxu0 %vm587_vm1, %v2184_v52 }
 0x314   :  { %v1403_v23 = vpack.c.bf16 %v1372_v38, %v1371_v14  ;;  %v1261_v53 = vadd.f32 %v4982_v2, %v1260_v56  ;;  %v1377_v37 = vmax.f32 %v1269_v12, 0.0 }
 0x315   :  { %v3699_v63 = vpop.f32.mrf.mxu0 }
 0x316   :  { %v1272_v51 = vadd.f32 %v3699_v63, %v4982_v2  ;;  %3732 = vmatprep.mubr.msk.bf16.mxu1 %vm587_vm1, %v1403_v23  ;;  %v1375_v36 = vmax.f32 %v1261_v53, 0.0 }
 0x317   :  { %v1263_v32 = vpop.f32.mrf.mxu0  ;;  %3733 = vmatmul.mubr.msk.bf16.vlgmr.msra.gmra.mxu1 %vm587_vm1, %v1404_v8 }
 0x318   :  { %v1264_v49 = vadd.f32 %v4982_v2, %v1263_v32  ;;  %3805 = vmatpush3.bf16.msra.mxu1 %v4421_v5  ;;  %v1378_v31 = vmax.f32 %v1272_v51, 0.0  ;;  %v4025_v5 = vld [vmem:[%s5541_s1 + $0x38] sm:$0xff]  }
 0x319   :  { %3806 = vmatprep.subr.bf16.mxu1 %v4023_v30 }
 0x31a   :  { %v1376_v58 = vmax.f32 %v1264_v49, 0.0  ;;  %3801 = vmatmul.mubr.msk.bf16.gmra.mxu0 %vm587_vm1, %v2185_v21  ;;  %v1406_v47 = vpack.c.bf16 %v1378_v31, %v1377_v37 }
 0x31c   :  { %v1405_v24 = vpack.c.bf16 %v1376_v58, %v1375_v36  ;;  %3807 = vmatpush3.bf16.msra.mxu1 %v4023_v30 }
 0x31d   :  { %3808 = vmatprep.subr.bf16.mxu1 %v4024_v43 }
 0x31e   :  { %3736 = vmatprep.mubr.msk.bf16.mxu1 %vm587_vm1, %v1405_v24 }
 0x31f   :  { %3737 = vmatmul.mubr.msk.bf16.gmra.mxu1 %vm587_vm1, %v1406_v47 }
 0x320   :  { %3809 = vmatpush3.bf16.msra.mxu1 %v4024_v43 }
 0x321   :  { %3810 = vmatprep.subr.bf16.mxu1 %v4025_v5 }
 0x322   :  { %v3702_v3 = vpop.f32.mrf.mxu0 }
 0x323   :  { %v1285_v59 = vadd.f32 %v3702_v3, %v4982_v2 }
 0x324   :  { %v1276_v6 = vpop.f32.mrf.mxu0  ;;  %3811 = vmatpush3.bf16.msra.mxu1 %v4025_v5 }
 0x325   :  { %3931 = vmatprep.subr.msk.bf16.mxu1 %vm636_vm0, %v4744_v39  ;;  %v1277_v27 = vadd.f32 %v4982_v2, %v1276_v6  ;;  %v1381_v18 = vmax.f32 %v1285_v59, 0.0 }
 0x326   :  { %v3703_v29 = vpop.f32.mrf.mxu0 }
 0x327   :  { %v1288_v26 = vadd.f32 %v3703_v29, %v4982_v2  ;;  %v1379_v0 = vmax.f32 %v1277_v27, 0.0 }
 0x328   :  { %v1279_v1 = vpop.f32.mrf.mxu0 }
 0x329   :  { %v1280_v15 = vadd.f32 %v4982_v2, %v1279_v1  ;;  %v1382_v10 = vmax.f32 %v1288_v26, 0.0 }
 0x32b   :  { %v1380_v48 = vmax.f32 %v1280_v15, 0.0  ;;  %v1408_v44 = vpack.c.bf16 %v1382_v10, %v1381_v18 }
 0x32d   :  { %v1407_v57 = vpack.c.bf16 %v1380_v48, %v1379_v0 }
 0x32f   :  { %3740 = vmatprep.mubr.msk.bf16.mxu1 %vm587_vm1, %v1407_v57 }
 0x330   :  { %3741 = vmatmul.mubr.msk.bf16.gmra.mxu1 %vm587_vm1, %v1408_v44 }
 0x33a   :  { %v3706_v39 = vpop.f32.mrf.mxu0 }
 0x33b   :  { %v1301_v33 = vadd.f32 %v3706_v39, %v4982_v2 }
 0x33c   :  { %v1292_v62 = vpop.f32.mrf.mxu0 }
 0x33d   :  { %v1293_v55 = vadd.f32 %v4982_v2, %v1292_v62  ;;  %v1385_v45 = vmax.f32 %v1301_v33, 0.0 }
 0x33e   :  { %v3707_v19 = vpop.f32.mrf.mxu0 }
 0x33f   :  { %v1304_v61 = vadd.f32 %v3707_v19, %v4982_v2  ;;  %v1383_v60 = vmax.f32 %v1293_v55, 0.0 }
 0x340   :  { %v1295_v11 = vpop.f32.mrf.mxu0 }
 0x341   :  { %v1296_v4 = vadd.f32 %v4982_v2, %v1295_v11  ;;  %v1386_v13 = vmax.f32 %v1304_v61, 0.0 }
 0x343   :  { %v1384_v7 = vmax.f32 %v1296_v4, 0.0  ;;  %v1410_v41 = vpack.c.bf16 %v1386_v13, %v1385_v45 }
 0x345   :  { %v1409_v35 = vpack.c.bf16 %v1384_v7, %v1383_v60 }
 0x347   :  { %3744 = vmatprep.mubr.msk.bf16.mxu1 %vm587_vm1, %v1409_v35  ;;  %v5050_v35 = vld [vmem:[%s5542_s2 + $0x1] ss:$0 sm:$0xff] }
 0x348   :  { %3745 = vmatmul.mubr.msk.bf16.gmra.mxu1 %vm587_vm1, %v1410_v41 }
 0x352   :  { %v3710_v40 = vpop.f32.mrf.mxu0 }
 0x353   :  { %v1317_v22 = vadd.f32 %v3710_v40, %v4982_v2 }
 0x354   :  { %v1308_v16 = vpop.f32.mrf.mxu0 }
 0x355   :  { %v1309_v54 = vadd.f32 %v4982_v2, %v1308_v16  ;;  %v1389_v9 = vmax.f32 %v1317_v22, 0.0 }
 0x356   :  { %v3711_v17 = vpop.f32.mrf.mxu0 }
 0x357   :  { %v1320_v25 = vadd.f32 %v3711_v17, %v4982_v2  ;;  %v1387_v14 = vmax.f32 %v1309_v54, 0.0 }
 0x358   :  { %v1311_v52 = vpop.f32.mrf.mxu0 }
 0x359   :  { %v1312_v42 = vadd.f32 %v4982_v2, %v1311_v52  ;;  %v1390_v46 = vmax.f32 %v1320_v25, 0.0 }
 0x35b   :  { %v1388_v38 = vmax.f32 %v1312_v42, 0.0  ;;  %v1412_v28 = vpack.c.bf16 %v1390_v46, %v1389_v9 }
 0x35d   :  { %v1411_v56 = vpack.c.bf16 %v1388_v38, %v1387_v14 }
 0x35f   :  { %3748 = vmatprep.mubr.msk.bf16.mxu1 %vm587_vm1, %v1411_v56 }
 0x360   :  { %3749 = vmatmul.mubr.msk.bf16.gmra.mxu1 %vm587_vm1, %v1412_v28 }
 0x36a   :  { %v3714_v20 = vpop.f32.mrf.mxu0 }
 0x36b   :  { %v1333_v51 = vadd.f32 %v3714_v20, %v4982_v2 }
 0x36c   :  { %v1324_v23 = vpop.f32.mrf.mxu0 }
 0x36d   :  { %v1325_v63 = vadd.f32 %v4982_v2, %v1324_v23  ;;  %v1393_v30 = vmax.f32 %v1333_v51, 0.0 }
 0x36e   :  { %v3715_v8 = vpop.f32.mrf.mxu0 }
 0x36f   :  { %v1336_v53 = vadd.f32 %v3715_v8, %v4982_v2  ;;  %v1391_v49 = vmax.f32 %v1325_v63, 0.0 }
 0x370   :  { %v1327_v12 = vpop.f32.mrf.mxu0 }
 0x371   :  { %v1328_v32 = vadd.f32 %v4982_v2, %v1327_v12  ;;  %v1394_v21 = vmax.f32 %v1336_v53, 0.0 }
 0x373   :  { %v1392_v31 = vmax.f32 %v1328_v32, 0.0  ;;  %v1414_v58 = vpack.c.bf16 %v1394_v21, %v1393_v30 }
 0x375   :  { %v1413_v36 = vpack.c.bf16 %v1392_v31, %v1391_v49 }
 0x377   :  { %3752 = vmatprep.mubr.msk.bf16.mxu1 %vm587_vm1, %v1413_v36  ;;  %v5550_v36 = vld [vmem:[#allocation2_spill] sm:$0xff] }
 0x378   :  { %3753 = vmatmul.mubr.msk.bf16.gmra.mxu1 %vm587_vm1, %v1414_v58 }
 0x382   :  { %v3718_v37 = vpop.f32.mrf.mxu0 }
 0x383   :  { %v1349_v3 = vadd.f32 %v3718_v37, %v4982_v2 }
 0x384   :  { %v1340_v24 = vpop.f32.mrf.mxu0 }
 0x385   :  { %v1341_v43 = vadd.f32 %v4982_v2, %v1340_v24  ;;  %v1397_v1 = vmax.f32 %v1349_v3, 0.0 }
 0x386   :  { %v3719_v47 = vpop.f32.mrf.mxu0 }
 0x387   :  { %v1352_v5 = vadd.f32 %v3719_v47, %v4982_v2  ;;  %v1395_v26 = vmax.f32 %v1341_v43, 0.0 }
 0x388   :  { %v1343_v6 = vpop.f32.mrf.mxu0 }
 0x389   :  { %v1344_v29 = vadd.f32 %v4982_v2, %v1343_v6  ;;  %v1398_v27 = vmax.f32 %v1352_v5, 0.0  ;;  %v5551_v5 = vld [vmem:[#allocation3_spill] sm:$0xff] }
 0x38b   :  { %v1396_v59 = vmax.f32 %v1344_v29, 0.0  ;;  %v1416_v10 = vpack.c.bf16 %v1398_v27, %v1397_v1 }
 0x38d   :  { %v1415_v15 = vpack.c.bf16 %v1396_v59, %v1395_v26 }
 0x38f   :  { %3756 = vmatprep.mubr.msk.bf16.mxu1 %vm587_vm1, %v1415_v15 }
 0x390   :  { %3757 = vmatmul.mubr.msk.bf16.gmra.mxu1 %vm587_vm1, %v1416_v10 }
 0x39a   :  { %v3722_v0 = vpop.f32.mrf.mxu0 }
 0x39b   :  { %v1365_v39 = vadd.f32 %v3722_v0, %v4982_v2 }
 0x39c   :  { %v1356_v48 = vpop.f32.mrf.mxu0 }
 0x39d   :  { %v1357_v57 = vadd.f32 %v4982_v2, %v1356_v48  ;;  %v1401_v4 = vmax.f32 %v1365_v39, 0.0 }
 0x39e   :  { %v3723_v18 = vpop.f32.mrf.mxu0 }
 0x39f   :  { %v1368_v44 = vadd.f32 %v3723_v18, %v4982_v2  ;;  %v1399_v33 = vmax.f32 %v1357_v57, 0.0 }
 0x3a0   :  { %v1359_v62 = vpop.f32.mrf.mxu0 }
 0x3a1   :  { %v1360_v19 = vadd.f32 %v4982_v2, %v1359_v62  ;;  %v1402_v55 = vmax.f32 %v1368_v44, 0.0 }
 0x3a2   :  { %v3774_v61 = vpop.f32.mrf.mxu0 }
 0x3a3   :  { %v1400_v11 = vmax.f32 %v1360_v19, 0.0  ;;  %v1418_v7 = vpack.c.bf16 %v1402_v55, %v1401_v4  ;;  %v2277_v2 = vadd.f32 %v5050_v35, %v3774_v61 }
 0x3a4   :  { %v2268_v13 = vpop.f32.mrf.mxu0 }
 0x3a5   :  { %v1417_v60 = vpack.c.bf16 %v1400_v11, %v1399_v33  ;;  %v2269_v41 = vadd.f32 %v5050_v35, %v2268_v13  ;;  %v2397_v42 = vmax.f32 %v2277_v2, 0.0 }
 0x3a6   :  { %v3775_v45 = vpop.f32.mrf.mxu0 }
 0x3a7   :  { %v2280_v40 = vadd.f32 %v5050_v35, %v3775_v45  ;;  %3760 = vmatprep.mubr.msk.bf16.mxu1 %vm587_vm1, %v1417_v60  ;;  %v2395_v22 = vmax.f32 %v2269_v41, 0.0 }
 0x3a8   :  { %3761 = vmatmul.mubr.msk.bf16.gmra.mxu1 %vm587_vm1, %v1418_v7  ;;  %v2271_v16 = vpop.f32.mrf.mxu0 }
 0x3a9   :  { %v2272_v17 = vadd.f32 %v5050_v35, %v2271_v16  ;;  %v2398_v54 = vmax.f32 %v2280_v40, 0.0 }
 0x3aa   :  { %v3778_v25 = vpop.f32.mrf.mxu0 }
 0x3ab   :  { %v2396_v52 = vmax.f32 %v2272_v17, 0.0  ;;  %v2428_v38 = vpack.c.bf16 %v2398_v54, %v2397_v42  ;;  %v2293_v20 = vadd.f32 %v5050_v35, %v3778_v25 }
 0x3ac   :  { %v2284_v46 = vpop.f32.mrf.mxu0 }
 0x3ad   :  { %v2427_v14 = vpack.c.bf16 %v2396_v52, %v2395_v22  ;;  %v2285_v56 = vadd.f32 %v5050_v35, %v2284_v46  ;;  %v2401_v32 = vmax.f32 %v2293_v20, 0.0 }
 0x3ae   :  { %v3779_v9 = vpop.f32.mrf.mxu0 }
 0x3af   :  { %v2296_v28 = vadd.f32 %v5050_v35, %v3779_v9  ;;  %3812 = vmatprep.mubr.msk.bf16.mxu1 %vm587_vm1, %v2427_v14  ;;  %v2399_v51 = vmax.f32 %v2285_v56, 0.0 }
 0x3b0   :  { %v2287_v23 = vpop.f32.mrf.mxu0  ;;  %3813 = vmatmul.mubr.msk.bf16.vlgmr.msra.gmra.mxu1 %vm587_vm1, %v2428_v38 }
 0x3b1   :  { %v2288_v8 = vadd.f32 %v5050_v35, %v2287_v23  ;;  %3885 = vmatpush3.bf16.msra.mxu1 %v4750_v34  ;;  %v2402_v63 = vmax.f32 %v2296_v28, 0.0 }
 0x3b2   :  { %v3782_v53 = vpop.f32.mrf.mxu0  ;;  %3886 = vmatprep.subr.bf16.mxu1 %v4761_v50 }
 0x3b3   :  { %v2400_v12 = vmax.f32 %v2288_v8, 0.0  ;;  %v2430_v31 = vpack.c.bf16 %v2402_v63, %v2401_v32  ;;  %v2309_v34 = vadd.f32 %v5050_v35, %v3782_v53 }
 0x3b4   :  { %v2300_v21 = vpop.f32.mrf.mxu0 }
 0x3b5   :  { %v2429_v49 = vpack.c.bf16 %v2400_v12, %v2399_v51  ;;  %3887 = vmatpush3.bf16.msra.mxu1 %v4761_v50  ;;  %v2301_v58 = vadd.f32 %v5050_v35, %v2300_v21  ;;  %v2405_v29 = vmax.f32 %v2309_v34, 0.0  ;;  %v5098_v51 = vld [vmem:[%s5542_s2 + $0x4] ss:$0 sm:$0xff] }
 0x3b6   :  { %v3783_v30 = vpop.f32.mrf.mxu0  ;;  %3888 = vmatprep.subr.bf16.mxu1 %v5550_v36 }
 0x3b7   :  { %v2312_v37 = vadd.f32 %v5050_v35, %v3783_v30  ;;  %3816 = vmatprep.mubr.msk.bf16.mxu1 %vm587_vm1, %v2429_v49  ;;  %v2403_v3 = vmax.f32 %v2301_v58, 0.0 }
 0x3b8   :  { %v2303_v24 = vpop.f32.mrf.mxu0  ;;  %3817 = vmatmul.mubr.msk.bf16.gmra.mxu1 %vm587_vm1, %v2430_v31 }
 0x3b9   :  { %v2304_v47 = vadd.f32 %v5050_v35, %v2303_v24  ;;  %3889 = vmatpush3.bf16.msra.mxu1 %v5550_v36  ;;  %v2406_v50 = vmax.f32 %v2312_v37, 0.0 }
 0x3ba   :  { %v3786_v43 = vpop.f32.mrf.mxu0  ;;  %3890 = vmatprep.subr.bf16.mxu1 %v5551_v5 }
 0x3bb   :  { %v2404_v6 = vmax.f32 %v2304_v47, 0.0  ;;  %v2432_v59 = vpack.c.bf16 %v2406_v50, %v2405_v29  ;;  %v2325_v0 = vadd.f32 %v5050_v35, %v3786_v43 }
 0x3bc   :  { %v2316_v27 = vpop.f32.mrf.mxu0 }
 0x3bd   :  { %v2431_v26 = vpack.c.bf16 %v2404_v6, %v2403_v3  ;;  %3891 = vmatpush3.bf16.msra.mxu1 %v5551_v5  ;;  %v2317_v15 = vadd.f32 %v5050_v35, %v2316_v27  ;;  %v2409_v19 = vmax.f32 %v2325_v0, 0.0 }
 0x3be   :  { %v3787_v1 = vpop.f32.mrf.mxu0 }
 0x3bf   :  { %v2328_v10 = vadd.f32 %v5050_v35, %v3787_v1  ;;  %3820 = vmatprep.mubr.msk.bf16.mxu1 %vm587_vm1, %v2431_v26  ;;  %v2407_v39 = vmax.f32 %v2317_v15, 0.0 }
 0x3c0   :  { %v2319_v48 = vpop.f32.mrf.mxu0  ;;  %3821 = vmatmul.mubr.msk.bf16.gmra.mxu1 %vm587_vm1, %v2432_v59 }
 0x3c1   :  { %v2320_v18 = vadd.f32 %v5050_v35, %v2319_v48  ;;  %v2410_v57 = vmax.f32 %v2328_v10, 0.0 }
 0x3c2   :  { %v3790_v44 = vpop.f32.mrf.mxu0 }
 0x3c3   :  { %v2408_v62 = vmax.f32 %v2320_v18, 0.0  ;;  %v2434_v33 = vpack.c.bf16 %v2410_v57, %v2409_v19  ;;  %v2341_v60 = vadd.f32 %v5050_v35, %v3790_v44 }
 0x3c4   :  { %v2332_v55 = vpop.f32.mrf.mxu0 }
 0x3c5   :  { %v2433_v61 = vpack.c.bf16 %v2408_v62, %v2407_v39  ;;  %v2333_v4 = vadd.f32 %v5050_v35, %v2332_v55  ;;  %v2413_v17 = vmax.f32 %v2341_v60, 0.0 }
 0x3c6   :  { %v3791_v11 = vpop.f32.mrf.mxu0 }
 0x3c7   :  { %v2344_v13 = vadd.f32 %v5050_v35, %v3791_v11  ;;  %3824 = vmatprep.mubr.msk.bf16.mxu1 %vm587_vm1, %v2433_v61  ;;  %v2411_v2 = vmax.f32 %v2333_v4, 0.0 }
 0x3c8   :  { %v2335_v7 = vpop.f32.mrf.mxu0  ;;  %3825 = vmatmul.mubr.msk.bf16.gmra.mxu1 %vm587_vm1, %v2434_v33 }
 0x3c9   :  { %v2336_v45 = vadd.f32 %v5050_v35, %v2335_v7  ;;  %v2414_v41 = vmax.f32 %v2344_v13, 0.0 }
 0x3ca   :  { %v3794_v40 = vpop.f32.mrf.mxu0 }
 0x3cb   :  { %v2412_v16 = vmax.f32 %v2336_v45, 0.0  ;;  %v2436_v22 = vpack.c.bf16 %v2414_v41, %v2413_v17  ;;  %v2357_v14 = vadd.f32 %v5050_v35, %v3794_v40 }
 0x3cc   :  { %v2348_v54 = vpop.f32.mrf.mxu0 }
 0x3cd   :  { %v2435_v25 = vpack.c.bf16 %v2412_v16, %v2411_v2  ;;  %v2349_v42 = vadd.f32 %v5050_v35, %v2348_v54  ;;  %v2417_v8 = vmax.f32 %v2357_v14, 0.0 }
 0x3ce   :  { %v3795_v52 = vpop.f32.mrf.mxu0 }
 0x3cf   :  { %v2360_v46 = vadd.f32 %v5050_v35, %v3795_v52  ;;  %3828 = vmatprep.mubr.msk.bf16.mxu1 %vm587_vm1, %v2435_v25  ;;  %v2415_v20 = vmax.f32 %v2349_v42, 0.0 }
 0x3d0   :  { %v2351_v38 = vpop.f32.mrf.mxu0  ;;  %3829 = vmatmul.mubr.msk.bf16.gmra.mxu1 %vm587_vm1, %v2436_v22 }
 0x3d1   :  { %v2352_v9 = vadd.f32 %v5050_v35, %v2351_v38  ;;  %v2418_v56 = vmax.f32 %v2360_v46, 0.0 }
 0x3d2   :  { %v3798_v28 = vpop.f32.mrf.mxu0 }
 0x3d3   :  { %v2416_v23 = vmax.f32 %v2352_v9, 0.0  ;;  %v2438_v12 = vpack.c.bf16 %v2418_v56, %v2417_v8  ;;  %v2373_v30 = vadd.f32 %v5050_v35, %v3798_v28 }
 0x3d4   :  { %v2364_v63 = vpop.f32.mrf.mxu0 }
 0x3d5   :  { %v2437_v53 = vpack.c.bf16 %v2416_v23, %v2415_v20  ;;  %v2365_v21 = vadd.f32 %v5050_v35, %v2364_v63  ;;  %v2421_v6 = vmax.f32 %v2373_v30, 0.0 }
 0x3d6   :  { %v3799_v32 = vpop.f32.mrf.mxu0 }
 0x3d7   :  { %v2376_v49 = vadd.f32 %v5050_v35, %v3799_v32  ;;  %v3734_v31 = vpop.f32.mrf.mxu1  ;;  %3832 = vmatprep.mubr.msk.bf16.mxu1 %vm587_vm1, %v2437_v53  ;;  %v2419_v43 = vmax.f32 %v2365_v21, 0.0 }
 0x3d8   :  { %v1538_v36 = vadd.f32 %v3734_v31, %v5098_v51  ;;  %v2367_v58 = vpop.f32.mrf.mxu0  ;;  %3833 = vmatmul.mubr.msk.bf16.gmra.mxu1 %vm587_vm1, %v2438_v12 }
 0x3d9   :  { %v2368_v37 = vadd.f32 %v5050_v35, %v2367_v58  ;;  %v1529_v34 = vpop.f32.mrf.mxu1  ;;  %v2422_v24 = vmax.f32 %v2376_v49, 0.0 }
 0x3da   :  { %1659 = vst.msk [vmem:[%s5543_s3 + $0x10] sm:$0xff] %vm1656_vm2, %v1538_v36  ;;  %v1530_v47 = vadd.f32 %v5098_v51, %v1529_v34  ;;  %v3802_v50 = vpop.f32.mrf.mxu0 }
 0x3db   :  { %v2420_v5 = vmax.f32 %v2368_v37, 0.0  ;;  %v3735_v3 = vpop.f32.mrf.mxu1  ;;  %v2440_v1 = vpack.c.bf16 %v2422_v24, %v2421_v6  ;;  %v2389_v57 = vadd.f32 %v5050_v35, %v3802_v50 }
 0x3dc   :  { %1657 = vst.msk [vmem:[%s5543_s3] sm:$0xff] %vm1656_vm2, %v1530_v47  ;;  %v1541_v29 = vadd.f32 %v3735_v3, %v5098_v51  ;;  %v2380_v27 = vpop.f32.mrf.mxu0 }
 0x3dd   :  { %v2439_v26 = vpack.c.bf16 %v2420_v5, %v2419_v43  ;;  %v1532_v59 = vpop.f32.mrf.mxu1  ;;  %v2381_v0 = vadd.f32 %v5050_v35, %v2380_v27  ;;  %v2425_v13 = vmax.f32 %v2389_v57, 0.0 }
 0x3de   :  { %1660 = vst.msk [vmem:[%s5543_s3 + $0x18] sm:$0xff] %vm1656_vm2, %v1541_v29  ;;  %v1533_v15 = vadd.f32 %v5098_v51, %v1532_v59  ;;  %v3803_v10 = vpop.f32.mrf.mxu0 }
 0x3df   :  { %v2392_v48 = vadd.f32 %v5050_v35, %v3803_v10  ;;  %v3738_v18 = vpop.f32.mrf.mxu1  ;;  %3836 = vmatprep.mubr.msk.bf16.mxu1 %vm587_vm1, %v2439_v26  ;;  %v2423_v33 = vmax.f32 %v2381_v0, 0.0 }
 0x3e0   :  { %1658 = vst.msk [vmem:[%s5543_s3 + $0x8] sm:$0xff] %vm1656_vm2, %v1533_v15  ;;  %v1554_v44 = vadd.f32 %v3738_v18, %v5098_v51  ;;  %v2383_v39 = vpop.f32.mrf.mxu0  ;;  %3837 = vmatmul.mubr.msk.bf16.gmra.mxu1 %vm587_vm1, %v2440_v1 }
 0x3e1   :  { %v2384_v62 = vadd.f32 %v5050_v35, %v2383_v39  ;;  %v1545_v19 = vpop.f32.mrf.mxu1  ;;  %v2426_v55 = vmax.f32 %v2392_v48, 0.0 }
 0x3e2   :  { %1663 = vst.msk [vmem:[%s5543_s3 + $0x30] sm:$0xff] %vm1656_vm2, %v1554_v44  ;;  %v1546_v61 = vadd.f32 %v5098_v51, %v1545_v19  ;;  %v5277_v19 = vld [vmem:[%s5542_s2 + $0x2] ss:$0 sm:$0xff] }
 0x3e3   :  { %v2424_v11 = vmax.f32 %v2384_v62, 0.0  ;;  %v3739_v4 = vpop.f32.mrf.mxu1  ;;  %v2442_v45 = vpack.c.bf16 %v2426_v55, %v2425_v13 }
 0x3e4   :  { %1661 = vst.msk [vmem:[%s5543_s3 + $0x20] sm:$0xff] %vm1656_vm2, %v1546_v61  ;;  %v1557_v35 = vadd.f32 %v3739_v4, %v5098_v51 }
 0x3e5   :  { %v2441_v60 = vpack.c.bf16 %v2424_v11, %v2423_v33  ;;  %v1548_v7 = vpop.f32.mrf.mxu1 }
 0x3e6   :  { %1664 = vst.msk [vmem:[%s5543_s3 + $0x38] sm:$0xff] %vm1656_vm2, %v1557_v35  ;;  %v1549_v41 = vadd.f32 %v5098_v51, %v1548_v7 }
 0x3e7   :  { %3840 = vmatprep.mubr.msk.bf16.mxu1 %vm587_vm1, %v2441_v60 }
 0x3e8   :  { %1662 = vst.msk [vmem:[%s5543_s3 + $0x28] sm:$0xff] %vm1656_vm2, %v1549_v41  ;;  %3841 = vmatmul.mubr.msk.bf16.gmra.mxu1 %vm587_vm1, %v2442_v45 }
 0x3f0   :  { %v3742_v40 = vpop.f32.mrf.mxu1 }
 0x3f1   :  { %v1570_v2 = vadd.f32 %v3742_v40, %v5098_v51 }
 0x3f2   :  { %v1561_v16 = vpop.f32.mrf.mxu1 }
 0x3f3   :  { %1667 = vst.msk [vmem:[%s5543_s3 + $0x50] sm:$0xff] %vm1656_vm2, %v1570_v2  ;;  %v1562_v17 = vadd.f32 %v5098_v51, %v1561_v16 }
 0x3f4   :  { %v3743_v54 = vpop.f32.mrf.mxu1 }
 0x3f5   :  { %1665 = vst.msk [vmem:[%s5543_s3 + $0x40] sm:$0xff] %vm1656_vm2, %v1562_v17  ;;  %v1573_v25 = vadd.f32 %v3743_v54, %v5098_v51 }
 0x3f6   :  { %v1564_v22 = vpop.f32.mrf.mxu1 }
 0x3f7   :  { %1668 = vst.msk [vmem:[%s5543_s3 + $0x58] sm:$0xff] %vm1656_vm2, %v1573_v25  ;;  %v1565_v52 = vadd.f32 %v5098_v51, %v1564_v22 }
 0x3f9   :  { %1666 = vst.msk [vmem:[%s5543_s3 + $0x48] sm:$0xff] %vm1656_vm2, %v1565_v52 }
 0x408   :  { %v3746_v42 = vpop.f32.mrf.mxu1 }
 0x409   :  { %v1586_v46 = vadd.f32 %v3746_v42, %v5098_v51 }
 0x40a   :  { %v1577_v14 = vpop.f32.mrf.mxu1 }
 0x40b   :  { %1671 = vst.msk [vmem:[%s5543_s3 + $0x70] sm:$0xff] %vm1656_vm2, %v1586_v46  ;;  %v1578_v38 = vadd.f32 %v5098_v51, %v1577_v14 }
 0x40c   :  { %v3747_v9 = vpop.f32.mrf.mxu1 }
 0x40d   :  { %1669 = vst.msk [vmem:[%s5543_s3 + $0x60] sm:$0xff] %vm1656_vm2, %v1578_v38  ;;  %v1589_v56 = vadd.f32 %v3747_v9, %v5098_v51 }
 0x40e   :  { %v1580_v28 = vpop.f32.mrf.mxu1 }
 0x40f   :  { %1672 = vst.msk [vmem:[%s5543_s3 + $0x78] sm:$0xff] %vm1656_vm2, %v1589_v56  ;;  %v1581_v20 = vadd.f32 %v5098_v51, %v1580_v28 }
 0x411   :  { %1670 = vst.msk [vmem:[%s5543_s3 + $0x68] sm:$0xff] %vm1656_vm2, %v1581_v20 }
 0x420   :  { %v3750_v23 = vpop.f32.mrf.mxu1 }
 0x421   :  { %v1602_v8 = vadd.f32 %v3750_v23, %v5098_v51 }
 0x422   :  { %v1593_v63 = vpop.f32.mrf.mxu1 }
 0x423   :  { %1675 = vst.msk [vmem:[%s5543_s3 + $0x90] sm:$0xff] %vm1656_vm2, %v1602_v8  ;;  %v1594_v53 = vadd.f32 %v5098_v51, %v1593_v63 }
 0x424   :  { %v3751_v12 = vpop.f32.mrf.mxu1 }
 0x425   :  { %1673 = vst.msk [vmem:[%s5543_s3 + $0x80] sm:$0xff] %vm1656_vm2, %v1594_v53  ;;  %v1605_v32 = vadd.f32 %v3751_v12, %v5098_v51 }
 0x426   :  { %v1596_v21 = vpop.f32.mrf.mxu1 }
 0x427   :  { %1676 = vst.msk [vmem:[%s5543_s3 + $0x98] sm:$0xff] %vm1656_vm2, %v1605_v32  ;;  %v1597_v49 = vadd.f32 %v5098_v51, %v1596_v21 }
 0x429   :  { %1674 = vst.msk [vmem:[%s5543_s3 + $0x88] sm:$0xff] %vm1656_vm2, %v1597_v49 }
 0x438   :  { %v3754_v31 = vpop.f32.mrf.mxu1 }
 0x439   :  { %v1618_v30 = vadd.f32 %v3754_v31, %v5098_v51 }
 0x43a   :  { %v1609_v36 = vpop.f32.mrf.mxu1 }
 0x43b   :  { %1679 = vst.msk [vmem:[%s5543_s3 + $0xb0] sm:$0xff] %vm1656_vm2, %v1618_v30  ;;  %v1610_v58 = vadd.f32 %v5098_v51, %v1609_v36 }
 0x43c   :  { %v3755_v37 = vpop.f32.mrf.mxu1 }
 0x43d   :  { %1677 = vst.msk [vmem:[%s5543_s3 + $0xa0] sm:$0xff] %vm1656_vm2, %v1610_v58  ;;  %v1621_v34 = vadd.f32 %v3755_v37, %v5098_v51 }
 0x43e   :  { %v1612_v24 = vpop.f32.mrf.mxu1 }
 0x43f   :  { %1680 = vst.msk [vmem:[%s5543_s3 + $0xb8] sm:$0xff] %vm1656_vm2, %v1621_v34  ;;  %v1613_v47 = vadd.f32 %v5098_v51, %v1612_v24 }
 0x441   :  { %1678 = vst.msk [vmem:[%s5543_s3 + $0xa8] sm:$0xff] %vm1656_vm2, %v1613_v47 }
 0x450   :  { %v3758_v50 = vpop.f32.mrf.mxu1 }
 0x451   :  { %v1634_v43 = vadd.f32 %v3758_v50, %v5098_v51 }
 0x452   :  { %v1625_v5 = vpop.f32.mrf.mxu1 }
 0x453   :  { %1683 = vst.msk [vmem:[%s5543_s3 + $0xd0] sm:$0xff] %vm1656_vm2, %v1634_v43  ;;  %v1626_v3 = vadd.f32 %v5098_v51, %v1625_v5 }
 0x454   :  { %v3759_v6 = vpop.f32.mrf.mxu1 }
 0x455   :  { %1681 = vst.msk [vmem:[%s5543_s3 + $0xc0] sm:$0xff] %vm1656_vm2, %v1626_v3  ;;  %v1637_v29 = vadd.f32 %v3759_v6, %v5098_v51 }
 0x456   :  { %v1628_v27 = vpop.f32.mrf.mxu1 }
 0x457   :  { %1684 = vst.msk [vmem:[%s5543_s3 + $0xd8] sm:$0xff] %vm1656_vm2, %v1637_v29  ;;  %v1629_v26 = vadd.f32 %v5098_v51, %v1628_v27 }
 0x459   :  { %1682 = vst.msk [vmem:[%s5543_s3 + $0xc8] sm:$0xff] %vm1656_vm2, %v1629_v26 }
 0x468   :  { %v3762_v59 = vpop.f32.mrf.mxu1 }
 0x469   :  { %v1650_v1 = vadd.f32 %v3762_v59, %v5098_v51 }
 0x46a   :  { %v1641_v15 = vpop.f32.mrf.mxu1 }
 0x46b   :  { %1687 = vst.msk [vmem:[%s5543_s3 + $0xf0] sm:$0xff] %vm1656_vm2, %v1650_v1  ;;  %v1642_v10 = vadd.f32 %v5098_v51, %v1641_v15 }
 0x46c   :  { %v3763_v0 = vpop.f32.mrf.mxu1 }
 0x46d   :  { %1685 = vst.msk [vmem:[%s5543_s3 + $0xe0] sm:$0xff] %vm1656_vm2, %v1642_v10  ;;  %v1653_v48 = vadd.f32 %v3763_v0, %v5098_v51 }
 0x46e   :  { %v1644_v18 = vpop.f32.mrf.mxu1 }
 0x46f   :  { %1688 = vst.msk [vmem:[%s5543_s3 + $0xf8] sm:$0xff] %vm1656_vm2, %v1653_v48  ;;  %v1645_v57 = vadd.f32 %v5098_v51, %v1644_v18 }
 0x470   :  { %v3814_v44 = vpop.f32.mrf.mxu1 }
 0x471   :  { %1686 = vst.msk [vmem:[%s5543_s3 + $0xe8] sm:$0xff] %vm1656_vm2, %v1645_v57  ;;  %v2534_v33 = vadd.f32 %v5277_v19, %v3814_v44 }
 0x472   :  { %v2525_v39 = vpop.f32.mrf.mxu1 }
 0x473   :  { %v2526_v55 = vadd.f32 %v5277_v19, %v2525_v39  ;;  %v2654_v45 = vmax.f32 %v2534_v33, 0.0 }
 0x474   :  { %v3815_v62 = vpop.f32.mrf.mxu1 }
 0x475   :  { %v2537_v61 = vadd.f32 %v5277_v19, %v3815_v62  ;;  %v2652_v60 = vmax.f32 %v2526_v55, 0.0 }
 0x476   :  { %v2528_v11 = vpop.f32.mrf.mxu1 }
 0x477   :  { %v2529_v4 = vadd.f32 %v5277_v19, %v2528_v11  ;;  %v2655_v13 = vmax.f32 %v2537_v61, 0.0 }
 0x478   :  { %v3818_v35 = vpop.f32.mrf.mxu1 }
 0x479   :  { %v2653_v7 = vmax.f32 %v2529_v4, 0.0  ;;  %v2685_v2 = vpack.c.bf16 %v2655_v13, %v2654_v45  ;;  %v2550_v25 = vadd.f32 %v5277_v19, %v3818_v35 }
 0x47a   :  { %v2541_v41 = vpop.f32.mrf.mxu1 }
 0x47b   :  { %v2684_v40 = vpack.c.bf16 %v2653_v7, %v2652_v60  ;;  %v2542_v17 = vadd.f32 %v5277_v19, %v2541_v41  ;;  %v2658_v9 = vmax.f32 %v2550_v25, 0.0 }
 0x47c   :  { %v3819_v16 = vpop.f32.mrf.mxu1 }
 0x47d   :  { %v2553_v54 = vadd.f32 %v5277_v19, %v3819_v16  ;;  %3852 = vmatprep.mubr.msk.bf16.mxu0 %vm587_vm1, %v2684_v40  ;;  %v2656_v14 = vmax.f32 %v2542_v17, 0.0 }
 0x47e   :  { %v2544_v22 = vpop.f32.mrf.mxu1  ;;  %3853 = vmatmul.mubr.msk.bf16.vlgmr.msra.gmra.mxu0 %vm587_vm1, %v2685_v2 }
 0x47f   :  { %v2545_v52 = vadd.f32 %v5277_v19, %v2544_v22  ;;  %v2659_v42 = vmax.f32 %v2553_v54, 0.0 }
 0x480   :  { %v3822_v46 = vpop.f32.mrf.mxu1 }
 0x481   :  { %v2657_v38 = vmax.f32 %v2545_v52, 0.0  ;;  %v2687_v20 = vpack.c.bf16 %v2659_v42, %v2658_v9  ;;  %v2566_v53 = vadd.f32 %v5277_v19, %v3822_v46 }
 0x482   :  { %v2557_v56 = vpop.f32.mrf.mxu1 }
 0x483   :  { %v2686_v28 = vpack.c.bf16 %v2657_v38, %v2656_v14  ;;  %v2558_v8 = vadd.f32 %v5277_v19, %v2557_v56  ;;  %v2662_v36 = vmax.f32 %v2566_v53, 0.0 }
 0x484   :  { %v3823_v23 = vpop.f32.mrf.mxu1 }
 0x485   :  { %v2569_v63 = vadd.f32 %v5277_v19, %v3823_v23  ;;  %3856 = vmatprep.mubr.msk.bf16.mxu0 %vm587_vm1, %v2686_v28  ;;  %v2660_v31 = vmax.f32 %v2558_v8, 0.0 }
 0x486   :  { %v2560_v12 = vpop.f32.mrf.mxu1  ;;  %3857 = vmatmul.mubr.msk.bf16.gmra.mxu0 %vm587_vm1, %v2687_v20 }
 0x487   :  { %v2561_v32 = vadd.f32 %v5277_v19, %v2560_v12  ;;  %v2663_v21 = vmax.f32 %v2569_v63, 0.0 }
 0x488   :  { %v3826_v49 = vpop.f32.mrf.mxu1 }
 0x489   :  { %v2661_v30 = vmax.f32 %v2561_v32, 0.0  ;;  %v2689_v34 = vpack.c.bf16 %v2663_v21, %v2662_v36  ;;  %v2582_v43 = vadd.f32 %v5277_v19, %v3826_v49 }
 0x48a   :  { %v2573_v58 = vpop.f32.mrf.mxu1 }
 0x48b   :  { %v2688_v37 = vpack.c.bf16 %v2661_v30, %v2660_v31  ;;  %v2574_v47 = vadd.f32 %v5277_v19, %v2573_v58  ;;  %v2666_v59 = vmax.f32 %v2582_v43, 0.0 }
 0x48c   :  { %v3827_v24 = vpop.f32.mrf.mxu1 }
 0x48d   :  { %v2585_v50 = vadd.f32 %v5277_v19, %v3827_v24  ;;  %3860 = vmatprep.mubr.msk.bf16.mxu0 %vm587_vm1, %v2688_v37  ;;  %v2664_v27 = vmax.f32 %v2574_v47, 0.0 }
 0x48e   :  { %v2576_v5 = vpop.f32.mrf.mxu1  ;;  %3861 = vmatmul.mubr.msk.bf16.gmra.mxu0 %vm587_vm1, %v2689_v34 }
 0x48f   :  { %v2577_v3 = vadd.f32 %v5277_v19, %v2576_v5  ;;  %v2667_v6 = vmax.f32 %v2585_v50, 0.0 }
 0x490   :  { %v3830_v29 = vpop.f32.mrf.mxu1 }
 0x491   :  { %v2665_v26 = vmax.f32 %v2577_v3, 0.0  ;;  %v2691_v10 = vpack.c.bf16 %v2667_v6, %v2666_v59  ;;  %v2598_v57 = vadd.f32 %v5277_v19, %v3830_v29 }
 0x492   :  { %v2589_v1 = vpop.f32.mrf.mxu1 }
 0x493   :  { %v2690_v15 = vpack.c.bf16 %v2665_v26, %v2664_v27  ;;  %v2590_v48 = vadd.f32 %v5277_v19, %v2589_v1  ;;  %v2670_v11 = vmax.f32 %v2598_v57, 0.0  ;;  %v5330_v26 = vld [vmem:[%s5542_s2 + $0x3] ss:$0 sm:$0xff] }
 0x494   :  { %v3831_v0 = vpop.f32.mrf.mxu1 }
 0x495   :  { %v2601_v18 = vadd.f32 %v5277_v19, %v3831_v0  ;;  %3864 = vmatprep.mubr.msk.bf16.mxu0 %vm587_vm1, %v2690_v15  ;;  %v2668_v61 = vmax.f32 %v2590_v48, 0.0 }
 0x496   :  { %v2592_v44 = vpop.f32.mrf.mxu1  ;;  %3865 = vmatmul.mubr.msk.bf16.gmra.mxu0 %vm587_vm1, %v2691_v10 }
 0x497   :  { %v2593_v39 = vadd.f32 %v5277_v19, %v2592_v44  ;;  %v2671_v62 = vmax.f32 %v2601_v18, 0.0 }
 0x498   :  { %v3834_v55 = vpop.f32.mrf.mxu1 }
 0x499   :  { %v2669_v33 = vmax.f32 %v2593_v39, 0.0  ;;  %v2693_v35 = vpack.c.bf16 %v2671_v62, %v2670_v11  ;;  %v2614_v41 = vadd.f32 %v5277_v19, %v3834_v55 }
 0x49a   :  { %v2605_v4 = vpop.f32.mrf.mxu1 }
 0x49b   :  { %v2692_v13 = vpack.c.bf16 %v2669_v33, %v2668_v61  ;;  %v2606_v7 = vadd.f32 %v5277_v19, %v2605_v4  ;;  %v2674_v22 = vmax.f32 %v2614_v41, 0.0 }
 0x49c   :  { %v3835_v60 = vpop.f32.mrf.mxu1 }
 0x49d   :  { %v2617_v45 = vadd.f32 %v5277_v19, %v3835_v60  ;;  %3868 = vmatprep.mubr.msk.bf16.mxu0 %vm587_vm1, %v2692_v13  ;;  %v2672_v54 = vmax.f32 %v2606_v7, 0.0 }
 0x49e   :  { %v2608_v40 = vpop.f32.mrf.mxu1  ;;  %3869 = vmatmul.mubr.msk.bf16.gmra.mxu0 %vm587_vm1, %v2693_v35 }
 0x49f   :  { %v2609_v2 = vadd.f32 %v5277_v19, %v2608_v40  ;;  %v2675_v16 = vmax.f32 %v2617_v45, 0.0 }
 0x4a0   :  { %v3838_v17 = vpop.f32.mrf.mxu1 }
 0x4a1   :  { %v2673_v25 = vmax.f32 %v2609_v2, 0.0  ;;  %v2695_v46 = vpack.c.bf16 %v2675_v16, %v2674_v22  ;;  %v2630_v56 = vadd.f32 %v5277_v19, %v3838_v17 }
 0x4a2   :  { %v2621_v52 = vpop.f32.mrf.mxu1 }
 0x4a3   :  { %v2694_v42 = vpack.c.bf16 %v2673_v25, %v2672_v54  ;;  %v2622_v38 = vadd.f32 %v5277_v19, %v2621_v52  ;;  %v2678_v12 = vmax.f32 %v2630_v56, 0.0 }
 0x4a4   :  { %v3839_v14 = vpop.f32.mrf.mxu1 }
 0x4a5   :  { %v2633_v9 = vadd.f32 %v5277_v19, %v3839_v14  ;;  %3872 = vmatprep.mubr.msk.bf16.mxu0 %vm587_vm1, %v2694_v42  ;;  %v2676_v63 = vmax.f32 %v2622_v38, 0.0 }
 0x4a6   :  { %v2624_v28 = vpop.f32.mrf.mxu1  ;;  %3873 = vmatmul.mubr.msk.bf16.gmra.mxu0 %vm587_vm1, %v2695_v46 }
 0x4a7   :  { %v2625_v20 = vadd.f32 %v5277_v19, %v2624_v28  ;;  %v2679_v23 = vmax.f32 %v2633_v9, 0.0 }
 0x4a8   :  { %v3842_v8 = vpop.f32.mrf.mxu1 }
 0x4a9   :  { %v2677_v53 = vmax.f32 %v2625_v20, 0.0  ;;  %v2697_v49 = vpack.c.bf16 %v2679_v23, %v2678_v12  ;;  %v2646_v58 = vadd.f32 %v5277_v19, %v3842_v8 }
 0x4aa   :  { %v2637_v32 = vpop.f32.mrf.mxu1 }
 0x4ab   :  { %v2696_v21 = vpack.c.bf16 %v2677_v53, %v2676_v63  ;;  %v2638_v30 = vadd.f32 %v5277_v19, %v2637_v32  ;;  %v2682_v43 = vmax.f32 %v2646_v58, 0.0 }
 0x4ac   :  { %v3843_v31 = vpop.f32.mrf.mxu1 }
 0x4ad   :  { %v2649_v36 = vadd.f32 %v5277_v19, %v3843_v31  ;;  %3876 = vmatprep.mubr.msk.bf16.mxu0 %vm587_vm1, %v2696_v21  ;;  %v2680_v47 = vmax.f32 %v2638_v30, 0.0 }
 0x4ae   :  { %v2640_v37 = vpop.f32.mrf.mxu1  ;;  %3877 = vmatmul.mubr.msk.bf16.gmra.mxu0 %vm587_vm1, %v2697_v49 }
 0x4af   :  { %v2641_v34 = vadd.f32 %v5277_v19, %v2640_v37  ;;  %v2683_v24 = vmax.f32 %v2649_v36, 0.0 }
 0x4b1   :  { %v2681_v50 = vmax.f32 %v2641_v34, 0.0  ;;  %v2699_v3 = vpack.c.bf16 %v2683_v24, %v2682_v43 }
 0x4b3   :  { %v2698_v5 = vpack.c.bf16 %v2681_v50, %v2680_v47 }
 0x4b5   :  { %3880 = vmatprep.mubr.msk.bf16.mxu0 %vm587_vm1, %v2698_v5 }
 0x4b6   :  { %3881 = vmatmul.mubr.msk.bf16.gmra.mxu0 %vm587_vm1, %v2699_v3 }
 0x53e   :  { %v3854_v6 = vpop.f32.mrf.mxu0 }
 0x53f   :  { %v2791_v1 = vadd.f32 %v5330_v26, %v3854_v6 }
 0x540   :  { %v2782_v29 = vpop.f32.mrf.mxu0 }
 0x541   :  { %v2783_v19 = vadd.f32 %v5330_v26, %v2782_v29  ;;  %v2911_v44 = vmax.f32 %v2791_v1, 0.0 }
 0x542   :  { %v3855_v27 = vpop.f32.mrf.mxu0 }
 0x543   :  { %v2794_v59 = vadd.f32 %v5330_v26, %v3855_v27  ;;  %v2909_v18 = vmax.f32 %v2783_v19, 0.0 }
 0x544   :  { %v2785_v15 = vpop.f32.mrf.mxu0 }
 0x545   :  { %v2786_v10 = vadd.f32 %v5330_v26, %v2785_v15  ;;  %v2912_v0 = vmax.f32 %v2794_v59, 0.0 }
 0x546   :  { %v3858_v48 = vpop.f32.mrf.mxu0 }
 0x547   :  { %v2910_v57 = vmax.f32 %v2786_v10, 0.0  ;;  %v2942_v55 = vpack.c.bf16 %v2912_v0, %v2911_v44  ;;  %v2807_v4 = vadd.f32 %v5330_v26, %v3858_v48 }
 0x548   :  { %v2798_v39 = vpop.f32.mrf.mxu0 }
 0x549   :  { %v2941_v62 = vpack.c.bf16 %v2910_v57, %v2909_v18  ;;  %v2799_v33 = vadd.f32 %v5330_v26, %v2798_v39  ;;  %v2915_v40 = vmax.f32 %v2807_v4, 0.0 }
 0x54a   :  { %v3859_v61 = vpop.f32.mrf.mxu0 }
 0x54b   :  { %v2810_v11 = vadd.f32 %v5330_v26, %v3859_v61  ;;  %3892 = vmatprep.mubr.msk.bf16.mxu1 %vm587_vm1, %v2941_v62  ;;  %v2913_v45 = vmax.f32 %v2799_v33, 0.0 }
 0x54c   :  { %v2801_v13 = vpop.f32.mrf.mxu0  ;;  %3893 = vmatmul.mubr.msk.bf16.vlgmr.msra.gmra.mxu1 %vm587_vm1, %v2942_v55 }
 0x54d   :  { %v2802_v35 = vadd.f32 %v5330_v26, %v2801_v13  ;;  %v2916_v60 = vmax.f32 %v2810_v11, 0.0 }
 0x54e   :  { %v3862_v7 = vpop.f32.mrf.mxu0 }
 0x54f   :  { %v2914_v41 = vmax.f32 %v2802_v35, 0.0  ;;  %v2944_v17 = vpack.c.bf16 %v2916_v60, %v2915_v40  ;;  %v2823_v52 = vadd.f32 %v5330_v26, %v3862_v7 }
 0x550   :  { %v2814_v2 = vpop.f32.mrf.mxu0 }
 0x551   :  { %v2943_v16 = vpack.c.bf16 %v2914_v41, %v2913_v45  ;;  %v2815_v25 = vadd.f32 %v5330_v26, %v2814_v2  ;;  %v2919_v28 = vmax.f32 %v2823_v52, 0.0 }
 0x552   :  { %v3863_v54 = vpop.f32.mrf.mxu0 }
 0x553   :  { %v2826_v22 = vadd.f32 %v5330_v26, %v3863_v54  ;;  %3896 = vmatprep.mubr.msk.bf16.mxu1 %vm587_vm1, %v2943_v16  ;;  %v2917_v9 = vmax.f32 %v2815_v25, 0.0 }
 0x554   :  { %v2817_v42 = vpop.f32.mrf.mxu0  ;;  %3897 = vmatmul.mubr.msk.bf16.gmra.mxu1 %vm587_vm1, %v2944_v17 }
 0x555   :  { %v2818_v46 = vadd.f32 %v5330_v26, %v2817_v42  ;;  %v2920_v14 = vmax.f32 %v2826_v22, 0.0 }
 0x556   :  { %v3866_v38 = vpop.f32.mrf.mxu0 }
 0x557   :  { %v2918_v56 = vmax.f32 %v2818_v46, 0.0  ;;  %v2946_v8 = vpack.c.bf16 %v2920_v14, %v2919_v28  ;;  %v2839_v32 = vadd.f32 %v5330_v26, %v3866_v38 }
 0x558   :  { %v2830_v20 = vpop.f32.mrf.mxu0 }
 0x559   :  { %v2945_v23 = vpack.c.bf16 %v2918_v56, %v2917_v9  ;;  %v2831_v53 = vadd.f32 %v5330_v26, %v2830_v20  ;;  %v2923_v37 = vmax.f32 %v2839_v32, 0.0 }
 0x55a   :  { %v3867_v63 = vpop.f32.mrf.mxu0 }
 0x55b   :  { %v2842_v12 = vadd.f32 %v5330_v26, %v3867_v63  ;;  %3900 = vmatprep.mubr.msk.bf16.mxu1 %vm587_vm1, %v2945_v23  ;;  %v2921_v36 = vmax.f32 %v2831_v53, 0.0 }
 0x55c   :  { %v2833_v21 = vpop.f32.mrf.mxu0  ;;  %3901 = vmatmul.mubr.msk.bf16.gmra.mxu1 %vm587_vm1, %v2946_v8 }
 0x55d   :  { %v2834_v49 = vadd.f32 %v5330_v26, %v2833_v21  ;;  %v2924_v31 = vmax.f32 %v2842_v12, 0.0 }
 0x55e   :  { %v3870_v30 = vpop.f32.mrf.mxu0 }
 0x55f   :  { %v2922_v58 = vmax.f32 %v2834_v49, 0.0  ;;  %v2948_v47 = vpack.c.bf16 %v2924_v31, %v2923_v37  ;;  %v2855_v3 = vadd.f32 %v5330_v26, %v3870_v30 }
 0x560   :  { %v2846_v34 = vpop.f32.mrf.mxu0 }
 0x561   :  { %v2947_v24 = vpack.c.bf16 %v2922_v58, %v2921_v36  ;;  %v2847_v43 = vadd.f32 %v5330_v26, %v2846_v34  ;;  %v2927_v15 = vmax.f32 %v2855_v3, 0.0 }
 0x562   :  { %v3871_v50 = vpop.f32.mrf.mxu0 }
 0x563   :  { %v2858_v5 = vadd.f32 %v5330_v26, %v3871_v50  ;;  %3904 = vmatprep.mubr.msk.bf16.mxu1 %vm587_vm1, %v2947_v24  ;;  %v2925_v59 = vmax.f32 %v2847_v43, 0.0 }
 0x564   :  { %v2849_v6 = vpop.f32.mrf.mxu0  ;;  %3905 = vmatmul.mubr.msk.bf16.gmra.mxu1 %vm587_vm1, %v2948_v47 }
 0x565   :  { %v2850_v29 = vadd.f32 %v5330_v26, %v2849_v6  ;;  %v2928_v27 = vmax.f32 %v2858_v5, 0.0 }
 0x566   :  { %v3874_v19 = vpop.f32.mrf.mxu0 }
 0x567   :  { %v2926_v1 = vmax.f32 %v2850_v29, 0.0  ;;  %v2950_v48 = vpack.c.bf16 %v2928_v27, %v2927_v15  ;;  %v2871_v39 = vadd.f32 %v5330_v26, %v3874_v19 }
 0x568   :  { %v2862_v10 = vpop.f32.mrf.mxu0 }
 0x569   :  { %v2949_v0 = vpack.c.bf16 %v2926_v1, %v2925_v59  ;;  %v2863_v57 = vadd.f32 %v5330_v26, %v2862_v10  ;;  %v2931_v13 = vmax.f32 %v2871_v39, 0.0 }
 0x56a   :  { %v3875_v18 = vpop.f32.mrf.mxu0 }
 0x56b   :  { %v2874_v44 = vadd.f32 %v5330_v26, %v3875_v18  ;;  %3908 = vmatprep.mubr.msk.bf16.mxu1 %vm587_vm1, %v2949_v0  ;;  %v2929_v11 = vmax.f32 %v2863_v57, 0.0 }
 0x56c   :  { %v2865_v62 = vpop.f32.mrf.mxu0  ;;  %3909 = vmatmul.mubr.msk.bf16.gmra.mxu1 %vm587_vm1, %v2950_v48 }
 0x56d   :  { %v2866_v55 = vadd.f32 %v5330_v26, %v2865_v62  ;;  %v2932_v61 = vmax.f32 %v2874_v44, 0.0 }
 0x56e   :  { %v3878_v33 = vpop.f32.mrf.mxu0 }
 0x56f   :  { %v2930_v4 = vmax.f32 %v2866_v55, 0.0  ;;  %v2952_v7 = vpack.c.bf16 %v2932_v61, %v2931_v13  ;;  %v2887_v2 = vadd.f32 %v5330_v26, %v3878_v33 }
 0x570   :  { %v2878_v35 = vpop.f32.mrf.mxu0 }
 0x571   :  { %v2951_v60 = vpack.c.bf16 %v2930_v4, %v2929_v11  ;;  %v2879_v41 = vadd.f32 %v5330_v26, %v2878_v35  ;;  %v2935_v42 = vmax.f32 %v2887_v2, 0.0 }
 0x572   :  { %v3879_v45 = vpop.f32.mrf.mxu0 }
 0x573   :  { %v2890_v40 = vadd.f32 %v5330_v26, %v3879_v45  ;;  %3912 = vmatprep.mubr.msk.bf16.mxu1 %vm587_vm1, %v2951_v60  ;;  %v2933_v22 = vmax.f32 %v2879_v41, 0.0 }
 0x574   :  { %v2881_v16 = vpop.f32.mrf.mxu0  ;;  %3913 = vmatmul.mubr.msk.bf16.gmra.mxu1 %vm587_vm1, %v2952_v7 }
 0x575   :  { %v2882_v17 = vadd.f32 %v5330_v26, %v2881_v16  ;;  %v2936_v54 = vmax.f32 %v2890_v40, 0.0 }
 0x576   :  { %v3882_v25 = vpop.f32.mrf.mxu0 }
 0x577   :  { %v2934_v52 = vmax.f32 %v2882_v17, 0.0  ;;  %v2954_v38 = vpack.c.bf16 %v2936_v54, %v2935_v42  ;;  %v2903_v20 = vadd.f32 %v5330_v26, %v3882_v25 }
 0x578   :  { %v2894_v46 = vpop.f32.mrf.mxu0 }
 0x579   :  { %v2953_v14 = vpack.c.bf16 %v2934_v52, %v2933_v22  ;;  %v2895_v56 = vadd.f32 %v5330_v26, %v2894_v46  ;;  %v2939_v32 = vmax.f32 %v2903_v20, 0.0 }
 0x57a   :  { %v3883_v9 = vpop.f32.mrf.mxu0 }
 0x57b   :  { %v2906_v28 = vadd.f32 %v5330_v26, %v3883_v9  ;;  %3916 = vmatprep.mubr.msk.bf16.mxu1 %vm587_vm1, %v2953_v14  ;;  %v2937_v53 = vmax.f32 %v2895_v56, 0.0 }
 0x57c   :  { %v2897_v23 = vpop.f32.mrf.mxu0  ;;  %3917 = vmatmul.mubr.msk.bf16.gmra.mxu1 %vm587_vm1, %v2954_v38 }
 0x57d   :  { %v2898_v8 = vadd.f32 %v5330_v26, %v2897_v23  ;;  %v2940_v63 = vmax.f32 %v2906_v28, 0.0 }
 0x57f   :  { %v2938_v12 = vmax.f32 %v2898_v8, 0.0  ;;  %v2956_v49 = vpack.c.bf16 %v2940_v63, %v2939_v32 }
 0x581   :  { %v2955_v21 = vpack.c.bf16 %v2938_v12, %v2937_v53 }
 0x583   :  { %3920 = vmatprep.mubr.msk.bf16.mxu1 %vm587_vm1, %v2955_v21 }
 0x584   :  { %3921 = vmatmul.mubr.msk.bf16.gmra.mxu1 %vm587_vm1, %v2956_v49 }
 0x60c   :  { %v3894_v31 = vpop.f32.mrf.mxu1 }
 0x60d   :  { %v3048_v30 = vadd.f32 %v3894_v31, %v5098_v51 }
 0x60e   :  { %v3039_v36 = vpop.f32.mrf.mxu1 }
 0x60f   :  { %3414 = vst.msk [vmem:[%s5543_s3 + $0x110] sm:$0xff] %vm1656_vm2, %v3048_v30  ;;  %v3040_v26 = vadd.f32 %v5098_v51, %v3039_v36 }
 0x610   :  { %v3895_v58 = vpop.f32.mrf.mxu1 }
 0x611   :  { %3412 = vst.msk [vmem:[%s5543_s3 + $0x100] sm:$0xff] %vm1656_vm2, %v3040_v26  ;;  %v3051_v37 = vadd.f32 %v3895_v58, %v5098_v51 }
 0x612   :  { %v3042_v34 = vpop.f32.mrf.mxu1 }
 0x613   :  { %3415 = vst.msk [vmem:[%s5543_s3 + $0x118] sm:$0xff] %vm1656_vm2, %v3051_v37  ;;  %v3043_v24 = vadd.f32 %v5098_v51, %v3042_v34 }
 0x614   :  { %v3898_v47 = vpop.f32.mrf.mxu1 }
 0x615   :  { %3413 = vst.msk [vmem:[%s5543_s3 + $0x108] sm:$0xff] %vm1656_vm2, %v3043_v24  ;;  %v3064_v50 = vadd.f32 %v3898_v47, %v5098_v51 }
 0x616   :  { %v3055_v43 = vpop.f32.mrf.mxu1 }
 0x617   :  { %3418 = vst.msk [vmem:[%s5543_s3 + $0x130] sm:$0xff] %vm1656_vm2, %v3064_v50  ;;  %v3056_v5 = vadd.f32 %v5098_v51, %v3055_v43 }
 0x618   :  { %v3899_v3 = vpop.f32.mrf.mxu1 }
 0x619   :  { %3416 = vst.msk [vmem:[%s5543_s3 + $0x120] sm:$0xff] %vm1656_vm2, %v3056_v5  ;;  %v3067_v6 = vadd.f32 %v3899_v3, %v5098_v51 }
 0x61a   :  { %v3058_v29 = vpop.f32.mrf.mxu1 }
 0x61b   :  { %3419 = vst.msk [vmem:[%s5543_s3 + $0x138] sm:$0xff] %vm1656_vm2, %v3067_v6  ;;  %v3059_v27 = vadd.f32 %v5098_v51, %v3058_v29 }
 0x61c   :  { %v3902_v19 = vpop.f32.mrf.mxu1 }
 0x61d   :  { %3417 = vst.msk [vmem:[%s5543_s3 + $0x128] sm:$0xff] %vm1656_vm2, %v3059_v27  ;;  %v3080_v59 = vadd.f32 %v3902_v19, %v5098_v51 }
 0x61e   :  { %v3071_v1 = vpop.f32.mrf.mxu1 }
 0x61f   :  { %3422 = vst.msk [vmem:[%s5543_s3 + $0x150] sm:$0xff] %vm1656_vm2, %v3080_v59  ;;  %v3072_v15 = vadd.f32 %v5098_v51, %v3071_v1 }
 0x620   :  { %v3903_v10 = vpop.f32.mrf.mxu1 }
 0x621   :  { %3420 = vst.msk [vmem:[%s5543_s3 + $0x140] sm:$0xff] %vm1656_vm2, %v3072_v15  ;;  %v3083_v0 = vadd.f32 %v3903_v10, %v5098_v51 }
 0x622   :  { %v3074_v48 = vpop.f32.mrf.mxu1 }
 0x623   :  { %3423 = vst.msk [vmem:[%s5543_s3 + $0x158] sm:$0xff] %vm1656_vm2, %v3083_v0  ;;  %v3075_v18 = vadd.f32 %v5098_v51, %v3074_v48 }
 0x624   :  { %v3906_v57 = vpop.f32.mrf.mxu1 }
 0x625   :  { %3421 = vst.msk [vmem:[%s5543_s3 + $0x148] sm:$0xff] %vm1656_vm2, %v3075_v18  ;;  %v3096_v44 = vadd.f32 %v3906_v57, %v5098_v51 }
 0x626   :  { %v3087_v39 = vpop.f32.mrf.mxu1 }
 0x627   :  { %3426 = vst.msk [vmem:[%s5543_s3 + $0x170] sm:$0xff] %vm1656_vm2, %v3096_v44  ;;  %v3088_v62 = vadd.f32 %v5098_v51, %v3087_v39 }
 0x628   :  { %v3907_v55 = vpop.f32.mrf.mxu1 }
 0x629   :  { %3424 = vst.msk [vmem:[%s5543_s3 + $0x160] sm:$0xff] %vm1656_vm2, %v3088_v62  ;;  %v3099_v61 = vadd.f32 %v3907_v55, %v5098_v51 }
 0x62a   :  { %v3090_v33 = vpop.f32.mrf.mxu1 }
 0x62b   :  { %3427 = vst.msk [vmem:[%s5543_s3 + $0x178] sm:$0xff] %vm1656_vm2, %v3099_v61  ;;  %v3091_v11 = vadd.f32 %v5098_v51, %v3090_v33 }
 0x62c   :  { %v3910_v4 = vpop.f32.mrf.mxu1 }
 0x62d   :  { %3425 = vst.msk [vmem:[%s5543_s3 + $0x168] sm:$0xff] %vm1656_vm2, %v3091_v11  ;;  %v3112_v13 = vadd.f32 %v3910_v4, %v5098_v51 }
 0x62e   :  { %v3103_v35 = vpop.f32.mrf.mxu1 }
 0x62f   :  { %3430 = vst.msk [vmem:[%s5543_s3 + $0x190] sm:$0xff] %vm1656_vm2, %v3112_v13  ;;  %v3104_v60 = vadd.f32 %v5098_v51, %v3103_v35 }
 0x630   :  { %v3911_v7 = vpop.f32.mrf.mxu1 }
 0x631   :  { %3428 = vst.msk [vmem:[%s5543_s3 + $0x180] sm:$0xff] %vm1656_vm2, %v3104_v60  ;;  %v3115_v45 = vadd.f32 %v3911_v7, %v5098_v51 }
 0x632   :  { %v3106_v41 = vpop.f32.mrf.mxu1 }
 0x633   :  { %3431 = vst.msk [vmem:[%s5543_s3 + $0x198] sm:$0xff] %vm1656_vm2, %v3115_v45  ;;  %v3107_v40 = vadd.f32 %v5098_v51, %v3106_v41 }
 0x634   :  { %v3914_v2 = vpop.f32.mrf.mxu1 }
 0x635   :  { %3429 = vst.msk [vmem:[%s5543_s3 + $0x188] sm:$0xff] %vm1656_vm2, %v3107_v40  ;;  %v3128_v16 = vadd.f32 %v3914_v2, %v5098_v51 }
 0x636   :  { %v3119_v17 = vpop.f32.mrf.mxu1 }
 0x637   :  { %3434 = vst.msk [vmem:[%s5543_s3 + $0x1b0] sm:$0xff] %vm1656_vm2, %v3128_v16  ;;  %v3120_v54 = vadd.f32 %v5098_v51, %v3119_v17 }
 0x638   :  { %v3915_v25 = vpop.f32.mrf.mxu1 }
 0x639   :  { %3432 = vst.msk [vmem:[%s5543_s3 + $0x1a0] sm:$0xff] %vm1656_vm2, %v3120_v54  ;;  %v3131_v22 = vadd.f32 %v3915_v25, %v5098_v51 }
 0x63a   :  { %v3122_v52 = vpop.f32.mrf.mxu1 }
 0x63b   :  { %3435 = vst.msk [vmem:[%s5543_s3 + $0x1b8] sm:$0xff] %vm1656_vm2, %v3131_v22  ;;  %v3123_v42 = vadd.f32 %v5098_v51, %v3122_v52 }
 0x63c   :  { %v3918_v46 = vpop.f32.mrf.mxu1 }
 0x63d   :  { %3433 = vst.msk [vmem:[%s5543_s3 + $0x1a8] sm:$0xff] %vm1656_vm2, %v3123_v42  ;;  %v3144_v14 = vadd.f32 %v3918_v46, %v5098_v51 }
 0x63e   :  { %v3135_v38 = vpop.f32.mrf.mxu1 }
 0x63f   :  { %3438 = vst.msk [vmem:[%s5543_s3 + $0x1d0] sm:$0xff] %vm1656_vm2, %v3144_v14  ;;  %v3136_v9 = vadd.f32 %v5098_v51, %v3135_v38 }
 0x640   :  { %v3919_v56 = vpop.f32.mrf.mxu1 }
 0x641   :  { %3436 = vst.msk [vmem:[%s5543_s3 + $0x1c0] sm:$0xff] %vm1656_vm2, %v3136_v9  ;;  %v3147_v28 = vadd.f32 %v3919_v56, %v5098_v51 }
 0x642   :  { %v3138_v20 = vpop.f32.mrf.mxu1 }
 0x643   :  { %3439 = vst.msk [vmem:[%s5543_s3 + $0x1d8] sm:$0xff] %vm1656_vm2, %v3147_v28  ;;  %v3139_v23 = vadd.f32 %v5098_v51, %v3138_v20 }
 0x644   :  { %v3922_v8 = vpop.f32.mrf.mxu1 }
 0x645   :  { %3437 = vst.msk [vmem:[%s5543_s3 + $0x1c8] sm:$0xff] %vm1656_vm2, %v3139_v23  ;;  %v3160_v63 = vadd.f32 %v3922_v8, %v5098_v51 }
 0x646   :  { %v3151_v53 = vpop.f32.mrf.mxu1 }
 0x647   :  { %3442 = vst.msk [vmem:[%s5543_s3 + $0x1f0] sm:$0xff] %vm1656_vm2, %v3160_v63  ;;  %v3152_v12 = vadd.f32 %v5098_v51, %v3151_v53 }
 0x648   :  { %v3923_v32 = vpop.f32.mrf.mxu1 }
 0x649   :  { %3440 = vst.msk [vmem:[%s5543_s3 + $0x1e0] sm:$0xff] %vm1656_vm2, %v3152_v12  ;;  %v3163_v21 = vadd.f32 %v3923_v32, %v5098_v51 }
 0x64a   :  { %v3154_v49 = vpop.f32.mrf.mxu1 }
 0x64b   :  { %3443 = vst.msk [vmem:[%s5543_s3 + $0x1f8] sm:$0xff] %vm1656_vm2, %v3163_v21  ;;  %v3155_v31 = vadd.f32 %v5098_v51, %v3154_v49 }
 0x64d   :  { %3441 = vst.msk [vmem:[%s5543_s3 + $0x1e8] sm:$0xff] %vm1656_vm2, %v3155_v31 }

</bundles_post_ra>
